<compile_context>
chip_gen: v7x
topology: tpu7x:2x2x1
jax: 0.10.0
libtpu: 0.0.40
codegen_flags: <defaults>
</compile_context>

<pallas_src>
import math
import numpy as np

import jax
import jax.numpy as jnp
from jax.experimental import pallas as pl
from jax.experimental.pallas import tpu as pltpu

# ---------------- config (KLMConfig surrogate) ----------------
HIDDEN = 32
N_HEADS = 4
N_KV_HEADS = 2
HEAD_DIM = HIDDEN // N_HEADS            # 8
GROUP = N_HEADS // N_KV_HEADS           # 2
KV_SIZE = HEAD_DIM * N_KV_HEADS         # 16
INTERMEDIATE = 64
LN_EPS = 1e-5

QK_COLS = HIDDEN + KV_SIZE              # 48  (q|k columns that receive RoPE)
HEAD_COLS = QK_COLS + KV_SIZE + QK_COLS  # 112 fused head-projection output width
PACK = HIDDEN + QK_COLS + KV_SIZE       # 96  packed output slab width

# MXU operand dtype (accumulation is always f32 via preferred_element_type).
# bf16 is the native MXU path on v6e/v7x; set to jnp.float32 for exact f32 matmuls.
MXU_DTYPE = jnp.bfloat16


# ---------------- the single fused Segment kernel ----------------
def _segment_kernel(
    res_ref, q_ref, k_ref, v_ref, cos_ref, sin_ref,
    wo_ref, bo_ref, g2_ref, b2_ref,
    wgu_ref, bgu_ref, wd_ref, bd_ref,
    g1_ref, b1_ref, wh_ref, bh_ref,
    out_ref, attn_sc,
):
    f32 = jnp.float32
    BB, Sq, _ = res_ref.shape
    inv_sqrt_d = 1.0 / math.sqrt(HEAD_DIM)

    # ---- attention: one QK^T / PV per (batch, kv-head); the GROUP q heads are
    #      already stacked along sublanes.  Head outputs are written lane-dense
    #      into a VMEM scratch so out_proj is a single matmul afterwards.
    for b in range(BB):
        for g in range(N_KV_HEADS):
            qg = q_ref[b, g].astype(MXU_DTYPE)              # (GROUP*Sq, D)
            kg = k_ref[b, g].astype(MXU_DTYPE)              # (Skv, D)
            vg = v_ref[b, g].astype(MXU_DTYPE)              # (Skv, D)
            s = jax.lax.dot_general(qg, kg, (((1,), (1,)), ((), ())),
                                    preferred_element_type=f32) * inv_sqrt_d
            m = jnp.max(s, axis=-1, keepdims=True)
            p = jnp.exp(s - m)
            l = jnp.sum(p, axis=-1, keepdims=True)
            og = jnp.dot(p.astype(MXU_DTYPE), vg, preferred_element_type=f32)
            og = og * pl.reciprocal(l, approx=True)         # softmax denom on EUP
            for j in range(GROUP):
                h = g * GROUP + j                           # repeat_kv via grouping
                attn_sc[b * Sq:(b + 1) * Sq,
                        h * HEAD_DIM:(h + 1) * HEAD_DIM] = og[j * Sq:(j + 1) * Sq]

    def ln(x, g_ref, b_ref):
        mu = jnp.mean(x, axis=-1, keepdims=True)
        var = jnp.mean(jnp.square(x - mu), axis=-1, keepdims=True)
        return ((x - mu) * jax.lax.rsqrt(var + LN_EPS)
                * g_ref[...].astype(f32) + b_ref[...].astype(f32))

    rows = BB * Sq
    res = res_ref[...].reshape(rows, HIDDEN).astype(f32)
    attn = attn_sc[...].astype(MXU_DTYPE)                   # (rows, HIDDEN)

    # ---- LayerBottom: single out_proj matmul + residual, ln2, fused SwiGLU, residual
    h1 = (res + bo_ref[...].astype(f32)
          + jnp.dot(attn, wo_ref[...], preferred_element_type=f32))
    hn = ln(h1, g2_ref, b2_ref)
    gu = (jnp.dot(hn.astype(MXU_DTYPE), wgu_ref[...], preferred_element_type=f32)
          + bgu_ref[...].astype(f32))                       # (rows, 128) lane-dense
    gate = gu[:, :INTERMEDIATE]
    up = gu[:, INTERMEDIATE:]
    act = gate * jax.nn.sigmoid(gate) * up
    mlp = (jnp.dot(act.astype(MXU_DTYPE), wd_ref[...], preferred_element_type=f32)
           + bd_ref[...].astype(f32))
    h2 = mlp + h1

    # ---- LayerHead: ln1 + ONE fused q|k|v|q_rot|k_rot projection + one RoPE fma
    hn1 = ln(h2, g1_ref, b1_ref)
    proj = (jnp.dot(hn1.astype(MXU_DTYPE), wh_ref[...], preferred_element_type=f32)
            + bh_ref[...].astype(f32))                      # (rows, 112)
    base_qk = proj[:, :QK_COLS].reshape(BB, Sq, QK_COLS)
    v_cols = proj[:, QK_COLS:QK_COLS + KV_SIZE].reshape(BB, Sq, KV_SIZE)
    rot_qk = proj[:, QK_COLS + KV_SIZE:].reshape(BB, Sq, QK_COLS)
    cos = cos_ref[...].astype(f32)[None]                    # (1, Sq, 48)
    sin = sin_ref[...].astype(f32)[None]
    roped = base_qk * cos + rot_qk * sin                    # q|k RoPE in one fma

    # packed lane-dense output slab: [h2(32) | q_roped(32) | k_roped(16) | v(16)]
    out_ref[:, :, :HIDDEN] = h2.reshape(BB, Sq, HIDDEN).astype(out_ref.dtype)
    out_ref[:, :, HIDDEN:HIDDEN + QK_COLS] = roped.astype(out_ref.dtype)
    out_ref[:, :, HIDDEN + QK_COLS:] = v_cols.astype(out_ref.dtype)


def _tc_per_chip():
    """Best-effort TensorCores-per-chip (megacore chips: v4 / v5p / v7x)."""
    try:
        kind = jax.devices()[0].device_kind.lower()
    except Exception:
        return 1
    if ("v4" in kind) or ("v7" in kind) or ("7x" in kind) \
            or kind.strip() in ("tpu v5", "tpu v5p"):
        return 2
    return 1


# ---------------- Segment forward (wrapper) ----------------
def segment_forward(params, residual, rotary_pos_emb, q, ks, vs, *, batch_block=None):
    (wo, bo, g2, b2, wg, bg, wu, bu, wd, bd, g1, b1,
     wq, bq, wk, bk, wv, bv) = params
    B, Sq, _ = residual.shape
    Skv = ks.shape[2]

    # One grid step per TensorCore: fold the whole batch into one step on
    # single-TC chips (v5e/v6e); keep a "parallel" batch grid on megacore chips.
    if batch_block is None:
        n_tc = _tc_per_chip()
        gb = n_tc if (n_tc > 1 and B % n_tc == 0) else 1
        batch_block = B // gb
    assert B % batch_block == 0
    grid_b = B // batch_block

    # rotary tables, pre-tiled lane-dense across q + k heads: (Sq, 48)
    cos = rotary_pos_emb[0, 0]
    sin = rotary_pos_emb[1, 0]
    cos_qk = jnp.tile(cos, (1, N_HEADS + N_KV_HEADS))
    sin_qk = jnp.tile(sin, (1, N_HEADS + N_KV_HEADS))

    # ---- weight prep (one-time; would be precomputed for a real model) ----
    half = HEAD_DIM // 2

    def rot_cols(w, n):      # fold rotate_half into the projection columns
        w3 = w.reshape(*w.shape[:-1], n, HEAD_DIM)
        w3r = jnp.concatenate([-w3[..., half:], w3[..., :half]], axis=-1)
        return w3r.reshape(w.shape)

    w_head = jnp.concatenate(
        [wq, wk, wv, rot_cols(wq, N_HEADS), rot_cols(wk, N_KV_HEADS)], axis=1)  # (32,112)
    b_head = jnp.concatenate(
        [bq, bk, bv, rot_cols(bq, N_HEADS), rot_cols(bk, N_KV_HEADS)], axis=1)  # (1,112)
    w_gu = jnp.concatenate([wg, wu], axis=1)                                    # (32,128)
    b_gu = jnp.concatenate([bg, bu], axis=1)                                    # (1,128)

    wo_m, w_gu_m, wd_m, w_head_m = (w.astype(MXU_DTYPE) for w in (wo, w_gu, wd, w_head))

    # GQA: stack each kv head's GROUP query heads along sublanes.
    q_g = q.reshape(B, N_KV_HEADS, GROUP * Sq, HEAD_DIM)

    weights = (wo_m, bo, g2, b2, w_gu_m, b_gu, wd_m, bd, g1, b1, w_head_m, b_head)

    def batch_spec(shape):
        nd = len(shape)
        return pl.BlockSpec((batch_block,) + tuple(shape[1:]),
                            lambda i, _nd=nd: (i,) + (0,) * (_nd - 1))

    def full_spec(a):
        nd = a.ndim
        return pl.BlockSpec(a.shape, lambda i, _nd=nd: (0,) * _nd)

    in_specs = ([batch_spec(residual.shape), batch_spec(q_g.shape),
                 batch_spec(ks.shape), batch_spec(vs.shape),
                 full_spec(cos_qk), full_spec(sin_qk)]
                + [full_spec(w) for w in weights])

    out_shape = jax.ShapeDtypeStruct((B, Sq, PACK), jnp.float32)
    out_specs = batch_spec(out_shape.shape)

    flops = int(B * Sq * (4 * N_HEADS * Skv * HEAD_DIM        # QK^T + PV
                          + 2 * HIDDEN * HIDDEN               # out_proj
                          + 2 * HIDDEN * (2 * INTERMEDIATE)   # fused gate|up
                          + 2 * INTERMEDIATE * HIDDEN         # down
                          + 2 * HIDDEN * HEAD_COLS))          # fused head proj
    transcendentals = int(B * Sq * (N_HEADS * Skv + INTERMEDIATE))
    ins = (residual, q_g, ks, vs, cos_qk, sin_qk) + weights
    bytes_accessed = int(sum(int(np.prod(x.shape)) * x.dtype.itemsize for x in ins)
                         + B * Sq * PACK * 4)

    slab = pl.pallas_call(
        _segment_kernel,
        out_shape=out_shape,
        grid=(grid_b,),
        in_specs=in_specs,
        out_specs=out_specs,
        scratch_shapes=[pltpu.VMEM((batch_block * Sq, HIDDEN), jnp.float32)],
        compiler_params=pltpu.CompilerParams(dimension_semantics=("parallel",)),
        cost_estimate=pl.CostEstimate(flops=flops, transcendentals=transcendentals,
                                      bytes_accessed=bytes_accessed),
    )(residual, q_g, ks, vs, cos_qk, sin_qk, *weights)

    # cheap wrapper-side unpacking of the lane-dense slab to the module's layout
    res_out = slab[..., :HIDDEN]
    q_out = slab[..., HIDDEN:2 * HIDDEN].reshape(
        B, Sq, N_HEADS, HEAD_DIM).transpose(0, 2, 1, 3)
    k_out = slab[..., 2 * HIDDEN:2 * HIDDEN + KV_SIZE].reshape(
        B, Sq, N_KV_HEADS, HEAD_DIM).transpose(0, 2, 1, 3)
    v_out = slab[..., 2 * HIDDEN + KV_SIZE:].reshape(
        B, Sq, N_KV_HEADS, HEAD_DIM).transpose(0, 2, 1, 3)
    return res_out, q_out, k_out, v_out


# ---------------- deterministic parameter init ----------------
def init_params(key):
    def dense(k, fan_in, fan_out):
        k1, k2 = jax.random.split(k)
        w = jax.random.normal(k1, (fan_in, fan_out), jnp.float32) * 0.05
        b = jax.random.normal(k2, (1, fan_out), jnp.float32) * 0.05
        return w, b

    keys = jax.random.split(key, 9)
    wo, bo = dense(keys[0], HIDDEN, HIDDEN)          # out_proj
    wg, bg = dense(keys[1], HIDDEN, INTERMEDIATE)    # mlp gate
    wu, bu = dense(keys[2], HIDDEN, INTERMEDIATE)    # mlp up
    wd, bd = dense(keys[3], INTERMEDIATE, HIDDEN)    # mlp down
    wq, bq = dense(keys[4], HIDDEN, HIDDEN)          # q_proj
    wk, bk = dense(keys[5], HIDDEN, KV_SIZE)         # k_proj
    wv, bv = dense(keys[6], HIDDEN, KV_SIZE)         # v_proj
    g2 = 1.0 + 0.1 * jax.random.normal(keys[7], (1, HIDDEN), jnp.float32)
    b2 = jnp.zeros((1, HIDDEN), jnp.float32)
    g1 = 1.0 + 0.1 * jax.random.normal(keys[8], (1, HIDDEN), jnp.float32)
    b1 = jnp.zeros((1, HIDDEN), jnp.float32)
    return (wo, bo, g2, b2, wg, bg, wu, bu, wd, bd, g1, b1, wq, bq, wk, bk, wv, bv)


# ---------------- pure-JAX reference ----------------
def reference(params, residual, rope, q, ks, vs):
    (wo, bo, g2, b2, wg, bg, wu, bu, wd, bd, g1, b1,
     wq, bq, wk, bk, wv, bv) = params
    B, Sq, _ = residual.shape

    k_rep = jnp.repeat(ks, GROUP, axis=1)
    v_rep = jnp.repeat(vs, GROUP, axis=1)
    s = jnp.einsum('bhqd,bhkd->bhqk', q, k_rep) / math.sqrt(HEAD_DIM)
    p = jax.nn.softmax(s, axis=-1)
    attn = jnp.einsum('bhqk,bhkd->bhqd', p, v_rep)
    attn = attn.transpose(0, 2, 1, 3).reshape(B, Sq, HIDDEN)

    def ln(x, g, bt):
        mu = x.mean(-1, keepdims=True)
        var = ((x - mu) ** 2).mean(-1, keepdims=True)
        return (x - mu) * jax.lax.rsqrt(var + LN_EPS) * g + bt

    h = attn @ wo + bo + residual
    res2 = h
    hn = ln(h, g2, b2)
    mlp = (jax.nn.silu(hn @ wg + bg) * (hn @ wu + bu)) @ wd + bd
    h2 = mlp + res2

    hn1 = ln(h2, g1, b1)
    qs, kst, vst = hn1 @ wq + bq, hn1 @ wk + bk, hn1 @ wv + bv
    q4 = qs.reshape(B, Sq, N_HEADS, HEAD_DIM).transpose(0, 2, 1, 3)
    k4 = kst.reshape(B, Sq, N_KV_HEADS, HEAD_DIM).transpose(0, 2, 1, 3)
    v4 = vst.reshape(B, Sq, N_KV_HEADS, HEAD_DIM).transpose(0, 2, 1, 3)

    half = HEAD_DIM // 2
    rot = lambda x: jnp.concatenate([-x[..., half:], x[..., :half]], axis=-1)
    cos, sin = rope[0][None], rope[1][None]      # (1,1,Sq,D)
    q_rot = q4 * cos + rot(q4) * sin
    k_rot = k4 * cos + rot(k4) * sin
    return h2, q_rot, k_rot, v4


if __name__ == "__main__":
    key = jax.random.PRNGKey(0)
    kp, kr, kq, kk, kv = jax.random.split(key, 5)
    params = init_params(kp)

    B, Sq, Skv = 2, 8, 8
    residual = jax.random.normal(kr, (B, Sq, HIDDEN), jnp.float32)
    q = jax.random.normal(kq, (B, N_HEADS, Sq, HEAD_DIM), jnp.float32)
    ks = jax.random.normal(kk, (B, N_KV_HEADS, Skv, HEAD_DIM), jnp.float32)
    vs = jax.random.normal(kv, (B, N_KV_HEADS, Skv, HEAD_DIM), jnp.float32)

    # rotary_pos_emb = stack(cos, sin) with shape (2, 1, Sq, HEAD_DIM)
    pos = jnp.arange(Sq, dtype=jnp.float32)[:, None]
    inv = 1.0 / (10000.0 ** (jnp.arange(0, HEAD_DIM, 2, dtype=jnp.float32) / HEAD_DIM))
    ang = jnp.concatenate([pos * inv[None, :]] * 2, axis=-1)     # (Sq, D)
    rope = jnp.stack([jnp.cos(ang), jnp.sin(ang)])[:, None]      # (2, 1, Sq, D)

    fwd = jax.jit(segment_forward)
    outs = jax.block_until_ready(fwd(params, residual, rope, q, ks, vs))

    refs = reference(params, residual, rope, q, ks, vs)
    # bf16 MXU operands (f32 accumulate) -> relaxed tolerance; use
    # MXU_DTYPE = jnp.float32 for 2e-3-level agreement with the f32 reference.
    tol = 2e-2 if MXU_DTYPE == jnp.bfloat16 else 2e-3
    for o, r in zip(outs, refs):
        np.testing.assert_allclose(np.asarray(o), np.asarray(r), rtol=tol, atol=tol)

    print("KERNEL_OK")
</pallas_src>

<mosaic_0001>
module attributes {stable_mosaic.version = 11 : i64} {
  func.func @_segment_kernel(%arg0: i32, %arg1: memref<2x8x32xf32, #tpu.memory_space<vmem>>, %arg2: memref<2x2x16x8xf32, #tpu.memory_space<vmem>>, %arg3: memref<2x2x8x8xf32, #tpu.memory_space<vmem>>, %arg4: memref<2x2x8x8xf32, #tpu.memory_space<vmem>>, %arg5: memref<8x48xf32, #tpu.memory_space<vmem>>, %arg6: memref<8x48xf32, #tpu.memory_space<vmem>>, %arg7: memref<32x32xbf16, #tpu.memory_space<vmem>>, %arg8: memref<1x32xf32, #tpu.memory_space<vmem>>, %arg9: memref<1x32xf32, #tpu.memory_space<vmem>>, %arg10: memref<1x32xf32, #tpu.memory_space<vmem>>, %arg11: memref<32x128xbf16, #tpu.memory_space<vmem>>, %arg12: memref<1x128xf32, #tpu.memory_space<vmem>>, %arg13: memref<64x32xbf16, #tpu.memory_space<vmem>>, %arg14: memref<1x32xf32, #tpu.memory_space<vmem>>, %arg15: memref<1x32xf32, #tpu.memory_space<vmem>>, %arg16: memref<1x32xf32, #tpu.memory_space<vmem>>, %arg17: memref<32x112xbf16, #tpu.memory_space<vmem>>, %arg18: memref<1x112xf32, #tpu.memory_space<vmem>>, %arg19: memref<2x8x96xf32, #tpu.memory_space<vmem>>, %arg20: memref<16x32xf32, #tpu.memory_space<vmem>>) attributes {dimension_semantics = [#tpu.dimension_semantics<parallel>], iteration_bounds = array<i64: 1>, scalar_prefetch = 0 : i64, scratch_operands = 1 : i64, tpu.core_type = #tpu.core_type<tc>, window_params = [{transform_indices = @transform_0, window_bounds = array<i64: 2, 8, 32>}, {transform_indices = @transform_1, window_bounds = array<i64: 2, 2, 16, 8>}, {transform_indices = @transform_2, window_bounds = array<i64: 2, 2, 8, 8>}, {transform_indices = @transform_3, window_bounds = array<i64: 2, 2, 8, 8>}, {pipeline_mode = #tpu.pipeline_mode<synchronous>, transform_indices = @transform_4, window_bounds = array<i64: 8, 48>}, {pipeline_mode = #tpu.pipeline_mode<synchronous>, transform_indices = @transform_5, window_bounds = array<i64: 8, 48>}, {pipeline_mode = #tpu.pipeline_mode<synchronous>, transform_indices = @transform_6, window_bounds = array<i64: 32, 32>}, {pipeline_mode = #tpu.pipeline_mode<synchronous>, transform_indices = @transform_7, window_bounds = array<i64: 1, 32>}, {pipeline_mode = #tpu.pipeline_mode<synchronous>, transform_indices = @transform_8, window_bounds = array<i64: 1, 32>}, {pipeline_mode = #tpu.pipeline_mode<synchronous>, transform_indices = @transform_9, window_bounds = array<i64: 1, 32>}, {pipeline_mode = #tpu.pipeline_mode<synchronous>, transform_indices = @transform_10, window_bounds = array<i64: 32, 128>}, {pipeline_mode = #tpu.pipeline_mode<synchronous>, transform_indices = @transform_11, window_bounds = array<i64: 1, 128>}, {pipeline_mode = #tpu.pipeline_mode<synchronous>, transform_indices = @transform_12, window_bounds = array<i64: 64, 32>}, {pipeline_mode = #tpu.pipeline_mode<synchronous>, transform_indices = @transform_13, window_bounds = array<i64: 1, 32>}, {pipeline_mode = #tpu.pipeline_mode<synchronous>, transform_indices = @transform_14, window_bounds = array<i64: 1, 32>}, {pipeline_mode = #tpu.pipeline_mode<synchronous>, transform_indices = @transform_15, window_bounds = array<i64: 1, 32>}, {pipeline_mode = #tpu.pipeline_mode<synchronous>, transform_indices = @transform_16, window_bounds = array<i64: 32, 112>}, {pipeline_mode = #tpu.pipeline_mode<synchronous>, transform_indices = @transform_17, window_bounds = array<i64: 1, 112>}, {transform_indices = @transform_18, window_bounds = array<i64: 2, 8, 96>}]} {
    %c0 = arith.constant 0 : index
    %c0_0 = arith.constant 0 : index
    %c0_1 = arith.constant 0 : index
    %c0_2 = arith.constant 0 : index
    %0 = vector.load %arg2[%c0, %c0_0, %c0_1, %c0_2] : memref<2x2x16x8xf32, #tpu.memory_space<vmem>>, vector<1x1x16x8xf32>
    %1 = vector.shape_cast %0 : vector<1x1x16x8xf32> to vector<16x8xf32>
    %2 = arith.truncf %1 : vector<16x8xf32> to vector<16x8xbf16>
    %c0_3 = arith.constant 0 : index
    %c0_4 = arith.constant 0 : index
    %c0_5 = arith.constant 0 : index
    %c0_6 = arith.constant 0 : index
    %3 = vector.load %arg3[%c0_3, %c0_4, %c0_5, %c0_6] : memref<2x2x8x8xf32, #tpu.memory_space<vmem>>, vector<1x1x8x8xf32>
    %4 = vector.shape_cast %3 : vector<1x1x8x8xf32> to vector<8x8xf32>
    %5 = arith.truncf %4 : vector<8x8xf32> to vector<8x8xbf16>
    %c0_7 = arith.constant 0 : index
    %c0_8 = arith.constant 0 : index
    %c0_9 = arith.constant 0 : index
    %c0_10 = arith.constant 0 : index
    %6 = vector.load %arg4[%c0_7, %c0_8, %c0_9, %c0_10] : memref<2x2x8x8xf32, #tpu.memory_space<vmem>>, vector<1x1x8x8xf32>
    %7 = vector.shape_cast %6 : vector<1x1x8x8xf32> to vector<8x8xf32>
    %8 = arith.truncf %7 : vector<8x8xf32> to vector<8x8xbf16>
    %cst = arith.constant dense<0.000000e+00> : vector<16x8xf32>
    %9 = tpu.matmul %2, %5, %cst {dimension_numbers = #tpu.dot_dimension_numbers<[1], [1], [0], [0], [0, 0, 1, 0], [], []>} : vector<16x8xbf16>, vector<8x8xbf16>, vector<16x8xf32> -> vector<16x8xf32>
    %cst_11 = arith.constant 0.353553385 : f32
    %10 = vector.broadcast %cst_11 : f32 to vector<16x8xf32>
    %11 = arith.mulf %9, %10 : vector<16x8xf32>
    %cst_12 = arith.constant dense<0xFF800000> : vector<16xf32>
    %12 = vector.multi_reduction <maximumf>, %11, %cst_12 [1] : vector<16x8xf32> to vector<16xf32>
    %13 = vector.shape_cast %12 : vector<16xf32> to vector<16x1xf32>
    %14 = vector.broadcast %13 : vector<16x1xf32> to vector<16x8xf32>
    %15 = arith.subf %11, %14 : vector<16x8xf32>
    %16 = math.exp %15 : vector<16x8xf32>
    %cst_13 = arith.constant dense<0.000000e+00> : vector<16xf32>
    %17 = vector.multi_reduction <add>, %16, %cst_13 [1] : vector<16x8xf32> to vector<16xf32>
    %18 = vector.shape_cast %17 : vector<16xf32> to vector<16x1xf32>
    %19 = arith.truncf %16 : vector<16x8xf32> to vector<16x8xbf16>
    %cst_14 = arith.constant dense<0.000000e+00> : vector<16x8xf32>
    %20 = tpu.matmul %19, %8, %cst_14 {dimension_numbers = #tpu.dot_dimension_numbers<[1], [0], [0], [1], [0, 0, 1, 1], [], []>} : vector<16x8xbf16>, vector<8x8xbf16>, vector<16x8xf32> -> vector<16x8xf32>
    %21 = tpu.reciprocal %18 {approx = true} : vector<16x1xf32> -> vector<16x1xf32>
    %22 = vector.broadcast %21 : vector<16x1xf32> to vector<16x8xf32>
    %23 = arith.mulf %20, %22 : vector<16x8xf32>
    %24 = vector.extract_strided_slice %23 {offsets = [0, 0], sizes = [8, 8], strides = [1, 1]} : vector<16x8xf32> to vector<8x8xf32>
    %c0_15 = arith.constant 0 : index
    %c0_16 = arith.constant 0 : index
    %25 = vector.load %arg20[%c0_15, %c0_16] : memref<16x32xf32, #tpu.memory_space<vmem>>, vector<8x8xf32>
    tpu.vector_store %arg20[%c0_15, %c0_16], %24 {strides = array<i32>} : memref<16x32xf32, #tpu.memory_space<vmem>>, vector<8x8xf32>,
    %26 = vector.extract_strided_slice %23 {offsets = [8, 0], sizes = [8, 8], strides = [1, 1]} : vector<16x8xf32> to vector<8x8xf32>
    %c0_17 = arith.constant 0 : index
    %c8 = arith.constant 8 : index
    %27 = vector.load %arg20[%c0_17, %c8] : memref<16x32xf32, #tpu.memory_space<vmem>>, vector<8x8xf32>
    tpu.vector_store %arg20[%c0_17, %c8], %26 {strides = array<i32>} : memref<16x32xf32, #tpu.memory_space<vmem>>, vector<8x8xf32>,
    %c0_18 = arith.constant 0 : index
    %c1 = arith.constant 1 : index
    %c0_19 = arith.constant 0 : index
    %c0_20 = arith.constant 0 : index
    %28 = vector.load %arg2[%c0_18, %c1, %c0_19, %c0_20] : memref<2x2x16x8xf32, #tpu.memory_space<vmem>>, vector<1x1x16x8xf32>
    %29 = vector.shape_cast %28 : vector<1x1x16x8xf32> to vector<16x8xf32>
    %30 = arith.truncf %29 : vector<16x8xf32> to vector<16x8xbf16>
    %c0_21 = arith.constant 0 : index
    %c1_22 = arith.constant 1 : index
    %c0_23 = arith.constant 0 : index
    %c0_24 = arith.constant 0 : index
    %31 = vector.load %arg3[%c0_21, %c1_22, %c0_23, %c0_24] : memref<2x2x8x8xf32, #tpu.memory_space<vmem>>, vector<1x1x8x8xf32>
    %32 = vector.shape_cast %31 : vector<1x1x8x8xf32> to vector<8x8xf32>
    %33 = arith.truncf %32 : vector<8x8xf32> to vector<8x8xbf16>
    %c0_25 = arith.constant 0 : index
    %c1_26 = arith.constant 1 : index
    %c0_27 = arith.constant 0 : index
    %c0_28 = arith.constant 0 : index
    %34 = vector.load %arg4[%c0_25, %c1_26, %c0_27, %c0_28] : memref<2x2x8x8xf32, #tpu.memory_space<vmem>>, vector<1x1x8x8xf32>
    %35 = vector.shape_cast %34 : vector<1x1x8x8xf32> to vector<8x8xf32>
    %36 = arith.truncf %35 : vector<8x8xf32> to vector<8x8xbf16>
    %cst_29 = arith.constant dense<0.000000e+00> : vector<16x8xf32>
    %37 = tpu.matmul %30, %33, %cst_29 {dimension_numbers = #tpu.dot_dimension_numbers<[1], [1], [0], [0], [0, 0, 1, 0], [], []>} : vector<16x8xbf16>, vector<8x8xbf16>, vector<16x8xf32> -> vector<16x8xf32>
    %cst_30 = arith.constant 0.353553385 : f32
    %38 = vector.broadcast %cst_30 : f32 to vector<16x8xf32>
    %39 = arith.mulf %37, %38 : vector<16x8xf32>
    %cst_31 = arith.constant dense<0xFF800000> : vector<16xf32>
    %40 = vector.multi_reduction <maximumf>, %39, %cst_31 [1] : vector<16x8xf32> to vector<16xf32>
    %41 = vector.shape_cast %40 : vector<16xf32> to vector<16x1xf32>
    %42 = vector.broadcast %41 : vector<16x1xf32> to vector<16x8xf32>
    %43 = arith.subf %39, %42 : vector<16x8xf32>
    %44 = math.exp %43 : vector<16x8xf32>
    %cst_32 = arith.constant dense<0.000000e+00> : vector<16xf32>
    %45 = vector.multi_reduction <add>, %44, %cst_32 [1] : vector<16x8xf32> to vector<16xf32>
    %46 = vector.shape_cast %45 : vector<16xf32> to vector<16x1xf32>
    %47 = arith.truncf %44 : vector<16x8xf32> to vector<16x8xbf16>
    %cst_33 = arith.constant dense<0.000000e+00> : vector<16x8xf32>
    %48 = tpu.matmul %47, %36, %cst_33 {dimension_numbers = #tpu.dot_dimension_numbers<[1], [0], [0], [1], [0, 0, 1, 1], [], []>} : vector<16x8xbf16>, vector<8x8xbf16>, vector<16x8xf32> -> vector<16x8xf32>
    %49 = tpu.reciprocal %46 {approx = true} : vector<16x1xf32> -> vector<16x1xf32>
    %50 = vector.broadcast %49 : vector<16x1xf32> to vector<16x8xf32>
    %51 = arith.mulf %48, %50 : vector<16x8xf32>
    %52 = vector.extract_strided_slice %51 {offsets = [0, 0], sizes = [8, 8], strides = [1, 1]} : vector<16x8xf32> to vector<8x8xf32>
    %c0_34 = arith.constant 0 : index
    %c16 = arith.constant 16 : index
    %53 = vector.load %arg20[%c0_34, %c16] : memref<16x32xf32, #tpu.memory_space<vmem>>, vector<8x8xf32>
    tpu.vector_store %arg20[%c0_34, %c16], %52 {strides = array<i32>} : memref<16x32xf32, #tpu.memory_space<vmem>>, vector<8x8xf32>,
    %54 = vector.extract_strided_slice %51 {offsets = [8, 0], sizes = [8, 8], strides = [1, 1]} : vector<16x8xf32> to vector<8x8xf32>
    %c0_35 = arith.constant 0 : index
    %c24 = arith.constant 24 : index
    %55 = vector.load %arg20[%c0_35, %c24] : memref<16x32xf32, #tpu.memory_space<vmem>>, vector<8x8xf32>
    tpu.vector_store %arg20[%c0_35, %c24], %54 {strides = array<i32>} : memref<16x32xf32, #tpu.memory_space<vmem>>, vector<8x8xf32>,
    %c1_36 = arith.constant 1 : index
    %c0_37 = arith.constant 0 : index
    %c0_38 = arith.constant 0 : index
    %c0_39 = arith.constant 0 : index
    %56 = vector.load %arg2[%c1_36, %c0_37, %c0_38, %c0_39] : memref<2x2x16x8xf32, #tpu.memory_space<vmem>>, vector<1x1x16x8xf32>
    %57 = vector.shape_cast %56 : vector<1x1x16x8xf32> to vector<16x8xf32>
    %58 = arith.truncf %57 : vector<16x8xf32> to vector<16x8xbf16>
    %c1_40 = arith.constant 1 : index
    %c0_41 = arith.constant 0 : index
    %c0_42 = arith.constant 0 : index
    %c0_43 = arith.constant 0 : index
    %59 = vector.load %arg3[%c1_40, %c0_41, %c0_42, %c0_43] : memref<2x2x8x8xf32, #tpu.memory_space<vmem>>, vector<1x1x8x8xf32>
    %60 = vector.shape_cast %59 : vector<1x1x8x8xf32> to vector<8x8xf32>
    %61 = arith.truncf %60 : vector<8x8xf32> to vector<8x8xbf16>
    %c1_44 = arith.constant 1 : index
    %c0_45 = arith.constant 0 : index
    %c0_46 = arith.constant 0 : index
    %c0_47 = arith.constant 0 : index
    %62 = vector.load %arg4[%c1_44, %c0_45, %c0_46, %c0_47] : memref<2x2x8x8xf32, #tpu.memory_space<vmem>>, vector<1x1x8x8xf32>
    %63 = vector.shape_cast %62 : vector<1x1x8x8xf32> to vector<8x8xf32>
    %64 = arith.truncf %63 : vector<8x8xf32> to vector<8x8xbf16>
    %cst_48 = arith.constant dense<0.000000e+00> : vector<16x8xf32>
    %65 = tpu.matmul %58, %61, %cst_48 {dimension_numbers = #tpu.dot_dimension_numbers<[1], [1], [0], [0], [0, 0, 1, 0], [], []>} : vector<16x8xbf16>, vector<8x8xbf16>, vector<16x8xf32> -> vector<16x8xf32>
    %cst_49 = arith.constant 0.353553385 : f32
    %66 = vector.broadcast %cst_49 : f32 to vector<16x8xf32>
    %67 = arith.mulf %65, %66 : vector<16x8xf32>
    %cst_50 = arith.constant dense<0xFF800000> : vector<16xf32>
    %68 = vector.multi_reduction <maximumf>, %67, %cst_50 [1] : vector<16x8xf32> to vector<16xf32>
    %69 = vector.shape_cast %68 : vector<16xf32> to vector<16x1xf32>
    %70 = vector.broadcast %69 : vector<16x1xf32> to vector<16x8xf32>
    %71 = arith.subf %67, %70 : vector<16x8xf32>
    %72 = math.exp %71 : vector<16x8xf32>
    %cst_51 = arith.constant dense<0.000000e+00> : vector<16xf32>
    %73 = vector.multi_reduction <add>, %72, %cst_51 [1] : vector<16x8xf32> to vector<16xf32>
    %74 = vector.shape_cast %73 : vector<16xf32> to vector<16x1xf32>
    %75 = arith.truncf %72 : vector<16x8xf32> to vector<16x8xbf16>
    %cst_52 = arith.constant dense<0.000000e+00> : vector<16x8xf32>
    %76 = tpu.matmul %75, %64, %cst_52 {dimension_numbers = #tpu.dot_dimension_numbers<[1], [0], [0], [1], [0, 0, 1, 1], [], []>} : vector<16x8xbf16>, vector<8x8xbf16>, vector<16x8xf32> -> vector<16x8xf32>
    %77 = tpu.reciprocal %74 {approx = true} : vector<16x1xf32> -> vector<16x1xf32>
    %78 = vector.broadcast %77 : vector<16x1xf32> to vector<16x8xf32>
    %79 = arith.mulf %76, %78 : vector<16x8xf32>
    %80 = vector.extract_strided_slice %79 {offsets = [0, 0], sizes = [8, 8], strides = [1, 1]} : vector<16x8xf32> to vector<8x8xf32>
    %c8_53 = arith.constant 8 : index
    %c0_54 = arith.constant 0 : index
    %81 = vector.load %arg20[%c8_53, %c0_54] : memref<16x32xf32, #tpu.memory_space<vmem>>, vector<8x8xf32>
    tpu.vector_store %arg20[%c8_53, %c0_54], %80 {strides = array<i32>} : memref<16x32xf32, #tpu.memory_space<vmem>>, vector<8x8xf32>,
    %82 = vector.extract_strided_slice %79 {offsets = [8, 0], sizes = [8, 8], strides = [1, 1]} : vector<16x8xf32> to vector<8x8xf32>
    %c8_55 = arith.constant 8 : index
    %c8_56 = arith.constant 8 : index
    %83 = vector.load %arg20[%c8_55, %c8_56] : memref<16x32xf32, #tpu.memory_space<vmem>>, vector<8x8xf32>
    tpu.vector_store %arg20[%c8_55, %c8_56], %82 {strides = array<i32>} : memref<16x32xf32, #tpu.memory_space<vmem>>, vector<8x8xf32>,
    %c1_57 = arith.constant 1 : index
    %c1_58 = arith.constant 1 : index
    %c0_59 = arith.constant 0 : index
    %c0_60 = arith.constant 0 : index
    %84 = vector.load %arg2[%c1_57, %c1_58, %c0_59, %c0_60] : memref<2x2x16x8xf32, #tpu.memory_space<vmem>>, vector<1x1x16x8xf32>
    %85 = vector.shape_cast %84 : vector<1x1x16x8xf32> to vector<16x8xf32>
    %86 = arith.truncf %85 : vector<16x8xf32> to vector<16x8xbf16>
    %c1_61 = arith.constant 1 : index
    %c1_62 = arith.constant 1 : index
    %c0_63 = arith.constant 0 : index
    %c0_64 = arith.constant 0 : index
    %87 = vector.load %arg3[%c1_61, %c1_62, %c0_63, %c0_64] : memref<2x2x8x8xf32, #tpu.memory_space<vmem>>, vector<1x1x8x8xf32>
    %88 = vector.shape_cast %87 : vector<1x1x8x8xf32> to vector<8x8xf32>
    %89 = arith.truncf %88 : vector<8x8xf32> to vector<8x8xbf16>
    %c1_65 = arith.constant 1 : index
    %c1_66 = arith.constant 1 : index
    %c0_67 = arith.constant 0 : index
    %c0_68 = arith.constant 0 : index
    %90 = vector.load %arg4[%c1_65, %c1_66, %c0_67, %c0_68] : memref<2x2x8x8xf32, #tpu.memory_space<vmem>>, vector<1x1x8x8xf32>
    %91 = vector.shape_cast %90 : vector<1x1x8x8xf32> to vector<8x8xf32>
    %92 = arith.truncf %91 : vector<8x8xf32> to vector<8x8xbf16>
    %cst_69 = arith.constant dense<0.000000e+00> : vector<16x8xf32>
    %93 = tpu.matmul %86, %89, %cst_69 {dimension_numbers = #tpu.dot_dimension_numbers<[1], [1], [0], [0], [0, 0, 1, 0], [], []>} : vector<16x8xbf16>, vector<8x8xbf16>, vector<16x8xf32> -> vector<16x8xf32>
    %cst_70 = arith.constant 0.353553385 : f32
    %94 = vector.broadcast %cst_70 : f32 to vector<16x8xf32>
    %95 = arith.mulf %93, %94 : vector<16x8xf32>
    %cst_71 = arith.constant dense<0xFF800000> : vector<16xf32>
    %96 = vector.multi_reduction <maximumf>, %95, %cst_71 [1] : vector<16x8xf32> to vector<16xf32>
    %97 = vector.shape_cast %96 : vector<16xf32> to vector<16x1xf32>
    %98 = vector.broadcast %97 : vector<16x1xf32> to vector<16x8xf32>
    %99 = arith.subf %95, %98 : vector<16x8xf32>
    %100 = math.exp %99 : vector<16x8xf32>
    %cst_72 = arith.constant dense<0.000000e+00> : vector<16xf32>
    %101 = vector.multi_reduction <add>, %100, %cst_72 [1] : vector<16x8xf32> to vector<16xf32>
    %102 = vector.shape_cast %101 : vector<16xf32> to vector<16x1xf32>
    %103 = arith.truncf %100 : vector<16x8xf32> to vector<16x8xbf16>
    %cst_73 = arith.constant dense<0.000000e+00> : vector<16x8xf32>
    %104 = tpu.matmul %103, %92, %cst_73 {dimension_numbers = #tpu.dot_dimension_numbers<[1], [0], [0], [1], [0, 0, 1, 1], [], []>} : vector<16x8xbf16>, vector<8x8xbf16>, vector<16x8xf32> -> vector<16x8xf32>
    %105 = tpu.reciprocal %102 {approx = true} : vector<16x1xf32> -> vector<16x1xf32>
    %106 = vector.broadcast %105 : vector<16x1xf32> to vector<16x8xf32>
    %107 = arith.mulf %104, %106 : vector<16x8xf32>
    %108 = vector.extract_strided_slice %107 {offsets = [0, 0], sizes = [8, 8], strides = [1, 1]} : vector<16x8xf32> to vector<8x8xf32>
    %c8_74 = arith.constant 8 : index
    %c16_75 = arith.constant 16 : index
    %109 = vector.load %arg20[%c8_74, %c16_75] : memref<16x32xf32, #tpu.memory_space<vmem>>, vector<8x8xf32>
    tpu.vector_store %arg20[%c8_74, %c16_75], %108 {strides = array<i32>} : memref<16x32xf32, #tpu.memory_space<vmem>>, vector<8x8xf32>,
    %110 = vector.extract_strided_slice %107 {offsets = [8, 0], sizes = [8, 8], strides = [1, 1]} : vector<16x8xf32> to vector<8x8xf32>
    %c8_76 = arith.constant 8 : index
    %c24_77 = arith.constant 24 : index
    %111 = vector.load %arg20[%c8_76, %c24_77] : memref<16x32xf32, #tpu.memory_space<vmem>>, vector<8x8xf32>
    tpu.vector_store %arg20[%c8_76, %c24_77], %110 {strides = array<i32>} : memref<16x32xf32, #tpu.memory_space<vmem>>, vector<8x8xf32>,
    %c0_78 = arith.constant 0 : index
    %c0_79 = arith.constant 0 : index
    %c0_80 = arith.constant 0 : index
    %112 = vector.load %arg1[%c0_78, %c0_79, %c0_80] : memref<2x8x32xf32, #tpu.memory_space<vmem>>, vector<2x8x32xf32>
    %113 = vector.shape_cast %112 : vector<2x8x32xf32> to vector<16x32xf32>
    %c0_81 = arith.constant 0 : index
    %c0_82 = arith.constant 0 : index
    %114 = vector.load %arg20[%c0_81, %c0_82] : memref<16x32xf32, #tpu.memory_space<vmem>>, vector<16x32xf32>
    %115 = arith.truncf %114 : vector<16x32xf32> to vector<16x32xbf16>
    %c0_83 = arith.constant 0 : index
    %c0_84 = arith.constant 0 : index
    %116 = vector.load %arg8[%c0_83, %c0_84] : memref<1x32xf32, #tpu.memory_space<vmem>>, vector<1x32xf32>
    %117 = vector.broadcast %116 : vector<1x32xf32> to vector<16x32xf32>
    %118 = arith.addf %113, %117 : vector<16x32xf32>
    %c0_85 = arith.constant 0 : index
    %c0_86 = arith.constant 0 : index
    %119 = vector.load %arg7[%c0_85, %c0_86] : memref<32x32xbf16, #tpu.memory_space<vmem>>, vector<32x32xbf16>
    %cst_87 = arith.constant dense<0.000000e+00> : vector<16x32xf32>
    %120 = tpu.matmul %115, %119, %cst_87 {dimension_numbers = #tpu.dot_dimension_numbers<[1], [0], [0], [1], [0, 0, 1, 1], [], []>} : vector<16x32xbf16>, vector<32x32xbf16>, vector<16x32xf32> -> vector<16x32xf32>
    %121 = arith.addf %118, %120 : vector<16x32xf32>
    %cst_88 = arith.constant dense<0.000000e+00> : vector<16xf32>
    %122 = vector.multi_reduction <add>, %121, %cst_88 [1] : vector<16x32xf32> to vector<16xf32>
    %123 = vector.shape_cast %122 : vector<16xf32> to vector<16x1xf32>
    %cst_89 = arith.constant 3.200000e+01 : f32
    %124 = vector.broadcast %cst_89 : f32 to vector<16x1xf32>
    %125 = arith.divf %123, %124 : vector<16x1xf32>
    %126 = vector.broadcast %125 : vector<16x1xf32> to vector<16x32xf32>
    %127 = arith.subf %121, %126 : vector<16x32xf32>
    %128 = arith.mulf %127, %127 : vector<16x32xf32>
    %cst_90 = arith.constant dense<0.000000e+00> : vector<16xf32>
    %129 = vector.multi_reduction <add>, %128, %cst_90 [1] : vector<16x32xf32> to vector<16xf32>
    %130 = vector.shape_cast %129 : vector<16xf32> to vector<16x1xf32>
    %cst_91 = arith.constant 3.200000e+01 : f32
    %131 = vector.broadcast %cst_91 : f32 to vector<16x1xf32>
    %132 = arith.divf %130, %131 : vector<16x1xf32>
    %133 = vector.broadcast %125 : vector<16x1xf32> to vector<16x32xf32>
    %134 = arith.subf %121, %133 : vector<16x32xf32>
    %cst_92 = arith.constant 9.99999974E-6 : f32
    %135 = vector.broadcast %cst_92 : f32 to vector<16x1xf32>
    %136 = arith.addf %132, %135 : vector<16x1xf32>
    %137 = math.rsqrt %136 : vector<16x1xf32>
    %138 = vector.broadcast %137 : vector<16x1xf32> to vector<16x32xf32>
    %139 = arith.mulf %134, %138 : vector<16x32xf32>
    %c0_93 = arith.constant 0 : index
    %c0_94 = arith.constant 0 : index
    %140 = vector.load %arg9[%c0_93, %c0_94] : memref<1x32xf32, #tpu.memory_space<vmem>>, vector<1x32xf32>
    %141 = vector.broadcast %140 : vector<1x32xf32> to vector<16x32xf32>
    %142 = arith.mulf %139, %141 : vector<16x32xf32>
    %c0_95 = arith.constant 0 : index
    %c0_96 = arith.constant 0 : index
    %143 = vector.load %arg10[%c0_95, %c0_96] : memref<1x32xf32, #tpu.memory_space<vmem>>, vector<1x32xf32>
    %144 = vector.broadcast %143 : vector<1x32xf32> to vector<16x32xf32>
    %145 = arith.addf %142, %144 : vector<16x32xf32>
    %146 = arith.truncf %145 : vector<16x32xf32> to vector<16x32xbf16>
    %c0_97 = arith.constant 0 : index
    %c0_98 = arith.constant 0 : index
    %147 = vector.load %arg11[%c0_97, %c0_98] : memref<32x128xbf16, #tpu.memory_space<vmem>>, vector<32x128xbf16>
    %cst_99 = arith.constant dense<0.000000e+00> : vector<16x128xf32>
    %148 = tpu.matmul %146, %147, %cst_99 {dimension_numbers = #tpu.dot_dimension_numbers<[1], [0], [0], [1], [0, 0, 1, 1], [], []>} : vector<16x32xbf16>, vector<32x128xbf16>, vector<16x128xf32> -> vector<16x128xf32>
    %c0_100 = arith.constant 0 : index
    %c0_101 = arith.constant 0 : index
    %149 = vector.load %arg12[%c0_100, %c0_101] : memref<1x128xf32, #tpu.memory_space<vmem>>, vector<1x128xf32>
    %150 = vector.broadcast %149 : vector<1x128xf32> to vector<16x128xf32>
    %151 = arith.addf %148, %150 : vector<16x128xf32>
    %152 = vector.extract_strided_slice %151 {offsets = [0, 0], sizes = [16, 64], strides = [1, 1]} : vector<16x128xf32> to vector<16x64xf32>
    %153 = vector.extract_strided_slice %151 {offsets = [0, 64], sizes = [16, 64], strides = [1, 1]} : vector<16x128xf32> to vector<16x64xf32>
    %154 = arith.negf %152 : vector<16x64xf32>
    %155 = math.exp %154 : vector<16x64xf32>
    %cst_102 = arith.constant 1.000000e+00 : f32
    %156 = vector.broadcast %cst_102 : f32 to vector<16x64xf32>
    %157 = arith.addf %156, %155 : vector<16x64xf32>
    %158 = arith.divf %156, %157 : vector<16x64xf32>
    %159 = arith.mulf %152, %158 : vector<16x64xf32>
    %160 = arith.mulf %159, %153 : vector<16x64xf32>
    %161 = arith.truncf %160 : vector<16x64xf32> to vector<16x64xbf16>
    %c0_103 = arith.constant 0 : index
    %c0_104 = arith.constant 0 : index
    %162 = vector.load %arg13[%c0_103, %c0_104] : memref<64x32xbf16, #tpu.memory_space<vmem>>, vector<64x32xbf16>
    %cst_105 = arith.constant dense<0.000000e+00> : vector<16x32xf32>
    %163 = tpu.matmul %161, %162, %cst_105 {dimension_numbers = #tpu.dot_dimension_numbers<[1], [0], [0], [1], [0, 0, 1, 1], [], []>} : vector<16x64xbf16>, vector<64x32xbf16>, vector<16x32xf32> -> vector<16x32xf32>
    %c0_106 = arith.constant 0 : index
    %c0_107 = arith.constant 0 : index
    %164 = vector.load %arg14[%c0_106, %c0_107] : memref<1x32xf32, #tpu.memory_space<vmem>>, vector<1x32xf32>
    %165 = vector.broadcast %164 : vector<1x32xf32> to vector<16x32xf32>
    %166 = arith.addf %163, %165 : vector<16x32xf32>
    %167 = arith.addf %166, %121 : vector<16x32xf32>
    %cst_108 = arith.constant dense<0.000000e+00> : vector<16xf32>
    %168 = vector.multi_reduction <add>, %167, %cst_108 [1] : vector<16x32xf32> to vector<16xf32>
    %169 = vector.shape_cast %168 : vector<16xf32> to vector<16x1xf32>
    %cst_109 = arith.constant 3.200000e+01 : f32
    %170 = vector.broadcast %cst_109 : f32 to vector<16x1xf32>
    %171 = arith.divf %169, %170 : vector<16x1xf32>
    %172 = vector.broadcast %171 : vector<16x1xf32> to vector<16x32xf32>
    %173 = arith.subf %167, %172 : vector<16x32xf32>
    %174 = arith.mulf %173, %173 : vector<16x32xf32>
    %cst_110 = arith.constant dense<0.000000e+00> : vector<16xf32>
    %175 = vector.multi_reduction <add>, %174, %cst_110 [1] : vector<16x32xf32> to vector<16xf32>
    %176 = vector.shape_cast %175 : vector<16xf32> to vector<16x1xf32>
    %cst_111 = arith.constant 3.200000e+01 : f32
    %177 = vector.broadcast %cst_111 : f32 to vector<16x1xf32>
    %178 = arith.divf %176, %177 : vector<16x1xf32>
    %179 = vector.broadcast %171 : vector<16x1xf32> to vector<16x32xf32>
    %180 = arith.subf %167, %179 : vector<16x32xf32>
    %cst_112 = arith.constant 9.99999974E-6 : f32
    %181 = vector.broadcast %cst_112 : f32 to vector<16x1xf32>
    %182 = arith.addf %178, %181 : vector<16x1xf32>
    %183 = math.rsqrt %182 : vector<16x1xf32>
    %184 = vector.broadcast %183 : vector<16x1xf32> to vector<16x32xf32>
    %185 = arith.mulf %180, %184 : vector<16x32xf32>
    %c0_113 = arith.constant 0 : index
    %c0_114 = arith.constant 0 : index
    %186 = vector.load %arg15[%c0_113, %c0_114] : memref<1x32xf32, #tpu.memory_space<vmem>>, vector<1x32xf32>
    %187 = vector.broadcast %186 : vector<1x32xf32> to vector<16x32xf32>
    %188 = arith.mulf %185, %187 : vector<16x32xf32>
    %c0_115 = arith.constant 0 : index
    %c0_116 = arith.constant 0 : index
    %189 = vector.load %arg16[%c0_115, %c0_116] : memref<1x32xf32, #tpu.memory_space<vmem>>, vector<1x32xf32>
    %190 = vector.broadcast %189 : vector<1x32xf32> to vector<16x32xf32>
    %191 = arith.addf %188, %190 : vector<16x32xf32>
    %192 = arith.truncf %191 : vector<16x32xf32> to vector<16x32xbf16>
    %c0_117 = arith.constant 0 : index
    %c0_118 = arith.constant 0 : index
    %193 = vector.load %arg17[%c0_117, %c0_118] : memref<32x112xbf16, #tpu.memory_space<vmem>>, vector<32x112xbf16>
    %cst_119 = arith.constant dense<0.000000e+00> : vector<16x112xf32>
    %194 = tpu.matmul %192, %193, %cst_119 {dimension_numbers = #tpu.dot_dimension_numbers<[1], [0], [0], [1], [0, 0, 1, 1], [], []>} : vector<16x32xbf16>, vector<32x112xbf16>, vector<16x112xf32> -> vector<16x112xf32>
    %c0_120 = arith.constant 0 : index
    %c0_121 = arith.constant 0 : index
    %195 = vector.load %arg18[%c0_120, %c0_121] : memref<1x112xf32, #tpu.memory_space<vmem>>, vector<1x112xf32>
    %196 = vector.broadcast %195 : vector<1x112xf32> to vector<16x112xf32>
    %197 = arith.addf %194, %196 : vector<16x112xf32>
    %198 = vector.extract_strided_slice %197 {offsets = [0, 0], sizes = [16, 48], strides = [1, 1]} : vector<16x112xf32> to vector<16x48xf32>
    %199 = vector.shape_cast %198 : vector<16x48xf32> to vector<2x8x48xf32>
    %200 = vector.extract_strided_slice %197 {offsets = [0, 48], sizes = [16, 16], strides = [1, 1]} : vector<16x112xf32> to vector<16x16xf32>
    %201 = vector.shape_cast %200 : vector<16x16xf32> to vector<2x8x16xf32>
    %202 = vector.extract_strided_slice %197 {offsets = [0, 64], sizes = [16, 48], strides = [1, 1]} : vector<16x112xf32> to vector<16x48xf32>
    %203 = vector.shape_cast %202 : vector<16x48xf32> to vector<2x8x48xf32>
    %c0_122 = arith.constant 0 : index
    %c0_123 = arith.constant 0 : index
    %204 = vector.load %arg5[%c0_122, %c0_123] : memref<8x48xf32, #tpu.memory_space<vmem>>, vector<8x48xf32>
    %205 = vector.shape_cast %204 : vector<8x48xf32> to vector<1x8x48xf32>
    %c0_124 = arith.constant 0 : index
    %c0_125 = arith.constant 0 : index
    %206 = vector.load %arg6[%c0_124, %c0_125] : memref<8x48xf32, #tpu.memory_space<vmem>>, vector<8x48xf32>
    %207 = vector.shape_cast %206 : vector<8x48xf32> to vector<1x8x48xf32>
    %208 = vector.broadcast %205 : vector<1x8x48xf32> to vector<2x8x48xf32>
    %209 = arith.mulf %199, %208 : vector<2x8x48xf32>
    %210 = vector.broadcast %207 : vector<1x8x48xf32> to vector<2x8x48xf32>
    %211 = arith.mulf %203, %210 : vector<2x8x48xf32>
    %212 = arith.addf %209, %211 : vector<2x8x48xf32>
    %213 = vector.shape_cast %167 : vector<16x32xf32> to vector<2x8x32xf32>
    %c0_126 = arith.constant 0 : index
    %c0_127 = arith.constant 0 : index
    %c0_128 = arith.constant 0 : index
    %214 = vector.load %arg19[%c0_126, %c0_127, %c0_128] : memref<2x8x96xf32, #tpu.memory_space<vmem>>, vector<2x8x32xf32>
    tpu.vector_store %arg19[%c0_126, %c0_127, %c0_128], %213 {strides = array<i32>} : memref<2x8x96xf32, #tpu.memory_space<vmem>>, vector<2x8x32xf32>,
    %c0_129 = arith.constant 0 : index
    %c0_130 = arith.constant 0 : index
    %c32 = arith.constant 32 : index
    %215 = vector.load %arg19[%c0_129, %c0_130, %c32] : memref<2x8x96xf32, #tpu.memory_space<vmem>>, vector<2x8x48xf32>
    tpu.vector_store %arg19[%c0_129, %c0_130, %c32], %212 {strides = array<i32>} : memref<2x8x96xf32, #tpu.memory_space<vmem>>, vector<2x8x48xf32>,
    %c0_131 = arith.constant 0 : index
    %c0_132 = arith.constant 0 : index
    %c80 = arith.constant 80 : index
    %216 = vector.load %arg19[%c0_131, %c0_132, %c80] : memref<2x8x96xf32, #tpu.memory_space<vmem>>, vector<2x8x16xf32>
    tpu.vector_store %arg19[%c0_131, %c0_132, %c80], %201 {strides = array<i32>} : memref<2x8x96xf32, #tpu.memory_space<vmem>>, vector<2x8x16xf32>,
    return
  }
  func.func @transform_0(%arg0: i32) -> (i32, i32, i32) {
    %c0_i32 = arith.constant 0 : i32
    %c0_i32_0 = arith.constant 0 : i32
    %c0_i32_1 = arith.constant 0 : i32
    return %arg0, %c0_i32, %c0_i32_0 : i32, i32, i32
  }
  func.func @transform_1(%arg0: i32) -> (i32, i32, i32, i32) {
    %c0_i32 = arith.constant 0 : i32
    %c0_i32_0 = arith.constant 0 : i32
    %c0_i32_1 = arith.constant 0 : i32
    %c0_i32_2 = arith.constant 0 : i32
    return %arg0, %c0_i32, %c0_i32_0, %c0_i32_1 : i32, i32, i32, i32
  }
  func.func @transform_2(%arg0: i32) -> (i32, i32, i32, i32) {
    %c0_i32 = arith.constant 0 : i32
    %c0_i32_0 = arith.constant 0 : i32
    %c0_i32_1 = arith.constant 0 : i32
    %c0_i32_2 = arith.constant 0 : i32
    return %arg0, %c0_i32, %c0_i32_0, %c0_i32_1 : i32, i32, i32, i32
  }
  func.func @transform_3(%arg0: i32) -> (i32, i32, i32, i32) {
    %c0_i32 = arith.constant 0 : i32
    %c0_i32_0 = arith.constant 0 : i32
    %c0_i32_1 = arith.constant 0 : i32
    %c0_i32_2 = arith.constant 0 : i32
    return %arg0, %c0_i32, %c0_i32_0, %c0_i32_1 : i32, i32, i32, i32
  }
  func.func @transform_4(%arg0: i32) -> (i32, i32) {
    %c0_i32 = arith.constant 0 : i32
    %c0_i32_0 = arith.constant 0 : i32
    %c0_i32_1 = arith.constant 0 : i32
    return %c0_i32, %c0_i32_0 : i32, i32
  }
  func.func @transform_5(%arg0: i32) -> (i32, i32) {
    %c0_i32 = arith.constant 0 : i32
    %c0_i32_0 = arith.constant 0 : i32
    %c0_i32_1 = arith.constant 0 : i32
    return %c0_i32, %c0_i32_0 : i32, i32
  }
  func.func @transform_6(%arg0: i32) -> (i32, i32) {
    %c0_i32 = arith.constant 0 : i32
    %c0_i32_0 = arith.constant 0 : i32
    %c0_i32_1 = arith.constant 0 : i32
    return %c0_i32, %c0_i32_0 : i32, i32
  }
  func.func @transform_7(%arg0: i32) -> (i32, i32) {
    %c0_i32 = arith.constant 0 : i32
    %c0_i32_0 = arith.constant 0 : i32
    %c0_i32_1 = arith.constant 0 : i32
    return %c0_i32, %c0_i32_0 : i32, i32
  }
  func.func @transform_8(%arg0: i32) -> (i32, i32) {
    %c0_i32 = arith.constant 0 : i32
    %c0_i32_0 = arith.constant 0 : i32
    %c0_i32_1 = arith.constant 0 : i32
    return %c0_i32, %c0_i32_0 : i32, i32
  }
  func.func @transform_9(%arg0: i32) -> (i32, i32) {
    %c0_i32 = arith.constant 0 : i32
    %c0_i32_0 = arith.constant 0 : i32
    %c0_i32_1 = arith.constant 0 : i32
    return %c0_i32, %c0_i32_0 : i32, i32
  }
  func.func @transform_10(%arg0: i32) -> (i32, i32) {
    %c0_i32 = arith.constant 0 : i32
    %c0_i32_0 = arith.constant 0 : i32
    %c0_i32_1 = arith.constant 0 : i32
    return %c0_i32, %c0_i32_0 : i32, i32
  }
  func.func @transform_11(%arg0: i32) -> (i32, i32) {
    %c0_i32 = arith.constant 0 : i32
    %c0_i32_0 = arith.constant 0 : i32
    %c0_i32_1 = arith.constant 0 : i32
    return %c0_i32, %c0_i32_0 : i32, i32
  }
  func.func @transform_12(%arg0: i32) -> (i32, i32) {
    %c0_i32 = arith.constant 0 : i32
    %c0_i32_0 = arith.constant 0 : i32
    %c0_i32_1 = arith.constant 0 : i32
    return %c0_i32, %c0_i32_0 : i32, i32
  }
  func.func @transform_13(%arg0: i32) -> (i32, i32) {
    %c0_i32 = arith.constant 0 : i32
    %c0_i32_0 = arith.constant 0 : i32
    %c0_i32_1 = arith.constant 0 : i32
    return %c0_i32, %c0_i32_0 : i32, i32
  }
  func.func @transform_14(%arg0: i32) -> (i32, i32) {
    %c0_i32 = arith.constant 0 : i32
    %c0_i32_0 = arith.constant 0 : i32
    %c0_i32_1 = arith.constant 0 : i32
    return %c0_i32, %c0_i32_0 : i32, i32
  }
  func.func @transform_15(%arg0: i32) -> (i32, i32) {
    %c0_i32 = arith.constant 0 : i32
    %c0_i32_0 = arith.constant 0 : i32
    %c0_i32_1 = arith.constant 0 : i32
    return %c0_i32, %c0_i32_0 : i32, i32
  }
  func.func @transform_16(%arg0: i32) -> (i32, i32) {
    %c0_i32 = arith.constant 0 : i32
    %c0_i32_0 = arith.constant 0 : i32
    %c0_i32_1 = arith.constant 0 : i32
    return %c0_i32, %c0_i32_0 : i32, i32
  }
  func.func @transform_17(%arg0: i32) -> (i32, i32) {
    %c0_i32 = arith.constant 0 : i32
    %c0_i32_0 = arith.constant 0 : i32
    %c0_i32_1 = arith.constant 0 : i32
    return %c0_i32, %c0_i32_0 : i32, i32
  }
  func.func @transform_18(%arg0: i32) -> (i32, i32, i32) {
    %c0_i32 = arith.constant 0 : i32
    %c0_i32_0 = arith.constant 0 : i32
    %c0_i32_1 = arith.constant 0 : i32
    return %arg0, %c0_i32, %c0_i32_0 : i32, i32, i32
  }
}

</mosaic_0001>

<bundles_post_ra>
// kernel: tile.15
= control target key start
LH: loop header
LB: loop body
LE: loop exit
PB: predicated region body
PF: predicated region fallthrough
CT: control target
= control target key end

     0   :  { %vm4_vm0 = vcmask 1047556   ;;  %s73_s14 = smov 40   ;;  %s74_s19 = smov 24   ;;  %vm6_vm1 = vcmask 64512   ;;  %vm16_vm2 = vcmask 392512   ;;  %vm26_vm3 = vcmask 326912   ;;  %s148_s0 = inlined_call_operand.vmem [shape: f32[8,6,8], index: 0, kind: input, shape index: {}]   ;;  %s149_s1 = inlined_call_operand.vmem [shape: f32[8,48], index: 1, kind: output, shape index: {}]  }
   0x1   :  { %v58_v0 = vld [vmem:[%s148_s0 + $0x5] ss:$8 sm:$0xf]   ;;  %v62_v3 = vld [vmem:[%s148_s0 + $0x3] ss:$8 sm:$0xf]  }
   0x2   :  { %v59_v1 = vld [vmem:[%s148_s0 + $0x5] ss:$8 sm:$0xf0]   ;;  %v63_v4 = vld [vmem:[%s148_s0 + $0x3] ss:$8 sm:$0xf0]  }
   0x3   :  { %v13_v2 = vsel %vm4_vm0, %v59_v1, %v58_v0  ;;  %v33_v5 = vsel %vm4_vm0, %v63_v4, %v62_v3  ;;  %v60_v6 = vld [vmem:[%s148_s0 + $0x4] ss:$8 sm:$0xf]   ;;  %v64_v9 = vld [vmem:[%s148_s0 + $0x2] ss:$8 sm:$0xf]  }
   0x4   :  { %14 = vrot.lane.b32.xlu0 %v13_v2, %s73_s14  ;;  %v61_v7 = vld [vmem:[%s148_s0 + $0x4] ss:$8 sm:$0xf0]   ;;  %34 = vrot.lane.b32.xlu1 %v33_v5, %s74_s19  ;;  %v65_v10 = vld [vmem:[%s148_s0 + $0x2] ss:$8 sm:$0xf0]  }
   0x5   :  { %v23_v8 = vsel %vm4_vm0, %v61_v7, %v60_v6  ;;  %v66_v11 = vld [vmem:[%s148_s0 + $0x1] ss:$8 sm:$0xf]   ;;  %v43_v12 = vsel %vm4_vm0, %v65_v10, %v64_v9  ;;  %s75_s28 = smov 32   ;;  %s77_s6 = smov 8   ;;  %vm36_vm4 = vcmask 261312  }
   0x6   :  { %v67_v13 = vld [vmem:[%s148_s0 + $0x1] ss:$8 sm:$0xf0]   ;;  %v2_v14 = vld [vmem:[%s148_s0] ss:$8 sm:$0xf]  }
   0x7   :  { %v3_v15 = vld [vmem:[%s148_s0] ss:$8 sm:$0xf0]   ;;  %s76_s0 = smov 16   ;;  %v53_v16 = vsel %vm4_vm0, %v67_v13, %v66_v11  ;;  %vm46_vm5 = vcmask 195712   ;;  %vm56_vm6 = vcmask 130112  }
   0x8   :  { %24 = vrot.lane.b32.xlu0 %v23_v8, %s75_s28  ;;  %44 = vrot.lane.b32.xlu1 %v43_v12, %s76_s0  ;;  %v5_v17 = vsel %vm4_vm0, %v3_v15, %v2_v14 }
   0x9   :  { %7 = vst.msk [vmem:[%s149_s1] sm:$0xff] %vm6_vm1, %v5_v17  }
   0xc   :  { %54 = vrot.lane.b32.xlu0 %v53_v16, %s77_s6 }
  0x76   :  { %v15_v18 = vpop.permute.xlu0 %14   ;;  %v35_v19 = vpop.permute.xlu1 %34  }
  0x77   :  { %17 = vst.msk [vmem:[%s149_s1] sm:$0xff] %vm16_vm2, %v15_v18  }
  0x7a   :  { %v25_v20 = vpop.permute.xlu0 %24   ;;  %v45_v21 = vpop.permute.xlu1 %44  }
  0x7b   :  { %27 = vst.msk [vmem:[%s149_s1] sm:$0xff] %vm26_vm3, %v25_v20  }
  0x7c   :  { %37 = vst.msk [vmem:[%s149_s1] sm:$0xff] %vm36_vm4, %v35_v19  }
  0x7d   :  { %47 = vst.msk [vmem:[%s149_s1] sm:$0xff] %vm46_vm5, %v45_v21  }
  0x7e   :  { %v55_v22 = vpop.permute.xlu0 %54  }
  0x7f   :  { %57 = vst.msk [vmem:[%s149_s1] sm:$0xff] %vm56_vm6, %v55_v22  }

// kernel: segment_forward.1
= control target key start
LH: loop header
LB: loop body
LE: loop exit
PB: predicated region body
PF: predicated region fallthrough
CT: control target
= control target key end

     0   :  { %v1294_v0 = vmov 0.0   ;;  %vm67_vm0 = vcmask 64512   ;;  %vm1295_vm1 = vmmov 0   ;;  %vm139_vm2 = vcmask 1043456   ;;  %s1297_s21 = smov 16   ;;  %s1298_s22 = smov 24   ;;  %s1650_s2 = inlined_call_operand.vmem [shape: f32[2,2,8,8], index: 2, kind: input, shape index: {}]   ;;  %s1651_s1 = inlined_call_operand.vmem [shape: f32[2,2,16,8], index: 1, kind: input, shape index: {}]   ;;  %s1652_s3 = inlined_call_operand.vmem [shape: f32[2,2,8,8], index: 3, kind: input, shape index: {}]   ;;  %s1653_s6 = inlined_call_operand.vmem [shape: bf16[32,32], index: 6, kind: input, shape index: {}]   ;;  %s1654_s0 = inlined_call_operand.vmem [shape: f32[2,8,32], index: 0, kind: input, shape index: {}]   ;;  %s1655_s7 = inlined_call_operand.vmem [shape: f32[1,32], index: 7, kind: input, shape index: {}]   ;;  %s1656_s10 = inlined_call_operand.vmem [shape: bf16[32,128], index: 10, kind: input, shape index: {}]   ;;  %s1657_s8 = inlined_call_operand.vmem [shape: f32[1,32], index: 8, kind: input, shape index: {}]   ;;  %s1658_s9 = inlined_call_operand.vmem [shape: f32[1,32], index: 9, kind: input, shape index: {}]   ;;  %s1659_s12 = inlined_call_operand.vmem [shape: bf16[64,32], index: 12, kind: input, shape index: {}]   ;;  %s1660_s11 = inlined_call_operand.vmem [shape: f32[1,128], index: 11, kind: input, shape index: {}]   ;;  %s1661_s13 = inlined_call_operand.vmem [shape: f32[1,32], index: 13, kind: input, shape index: {}]   ;;  %s1662_s18 = inlined_call_operand.vmem [shape: f32[2,8,96], index: 18, kind: output, shape index: {}]   ;;  %s1663_s16 = inlined_call_operand.vmem [shape: bf16[32,112], index: 16, kind: input, shape index: {}]   ;;  %s1664_s5 = inlined_call_operand.vmem [shape: f32[8,48], index: 5, kind: input, shape index: {}]   ;;  %s1665_s14 = inlined_call_operand.vmem [shape: f32[1,32], index: 14, kind: input, shape index: {}]   ;;  %s1666_s15 = inlined_call_operand.vmem [shape: f32[1,32], index: 15, kind: input, shape index: {}]   ;;  %s1667_s17 = inlined_call_operand.vmem [shape: f32[1,112], index: 17, kind: input, shape index: {}]   ;;  %s1668_s4 = inlined_call_operand.vmem [shape: f32[8,48], index: 4, kind: input, shape index: {}]  }
   0x1   :  { %1672 = sst [smem:[#allocation3_spill]] %s1650_s2  ;;  %1145 = vmatprep.subr.bf16.mxu0 %v1294_v0  ;;  %1147 = vmatprep.mubr.msk.bf16.mxu0 %vm1295_vm1, %v1294_v0  ;;  %vm193_vm3 = vcmask 130112   ;;  %vm328_vm4 = vcmask 195712   ;;  %vm334_vm5 = vcmask 261312   ;;  %vm640_vm6 = vcmask 261120  }
   0x2   :  { %1673 = sst [smem:[#allocation4_spill]] %s1651_s1  ;;  %s1675_s29 = sld [smem:[#allocation3_spill]]  ;;  %1151 = vmatprep.subr.bf16.mxu1 %v1294_v0  ;;  %1153 = vmatprep.mubr.msk.bf16.mxu1 %vm1295_vm1, %v1294_v0  ;;  %vm864_vm7 = vcmask 523264   ;;  %vm1053_vm8 = vcmask 654592   ;;  %vm1064_vm9 = vcmask 786048  }
   0x3   :  { %1674 = sst [smem:[#allocation5_spill]] %s1652_s3  ;;  %s1676_s19 = sld [smem:[#allocation4_spill]] }
   0x4   :  { %s1677_s3 = sld [smem:[#allocation5_spill]] }
   0x8   :  { %v63_v1 = vld [vmem:[%s1675_s29] sm:$0xff]  ;;  %v1075_v24 = vld [vmem:[%s1675_s29 + $0x8] sm:$0xff]  ;;  %v1081_v30 = vld [vmem:[%s1675_s29 + $0x10] sm:$0xff] }
   0x9   :  { %v64_v2 = vpack.c.bf16 %v63_v1, %v63_v1  ;;  %v60_v4 = vld [vmem:[%s1676_s19] sm:$0xff]  ;;  %v61_v5 = vld [vmem:[%s1676_s19 + $0x8] sm:$0xff]  ;;  %v201_v25 = vpack.c.bf16 %v1075_v24, %v1075_v24  ;;  %v1073_v31 = vld [vmem:[%s1676_s19 + $0x10] sm:$0xff]  ;;  %v342_v33 = vpack.c.bf16 %v1081_v30, %v1081_v30 }
   0xa   :  { %v62_v6 = vpack.c.bf16 %v61_v5, %v60_v4  ;;  %v65_v15 = vld [vmem:[%s1677_s3] sm:$0xff]  ;;  %v1074_v32 = vld [vmem:[%s1676_s19 + $0x18] sm:$0xff]  ;;  %v1080_v38 = vld [vmem:[%s1676_s19 + $0x28] sm:$0xff] }
   0xb   :  { %v72_v3 = vsel %vm67_vm0, %v64_v2, 0  ;;  %v66_v16 = vpack.c.bf16 %v65_v15, %v65_v15  ;;  %v209_v29 = vsel %vm67_vm0, %v201_v25, 0  ;;  %v198_v34 = vpack.c.bf16 %v1074_v32, %v1073_v31  ;;  %v1087_v36 = vld [vmem:[%s1675_s29 + $0x18] sm:$0xff]  ;;  %v1079_v37 = vld [vmem:[%s1676_s19 + $0x20] sm:$0xff]  ;;  %v1085_v42 = vld [vmem:[%s1676_s19 + $0x30] sm:$0xff] }
   0xc   :  { %1146 = vmatpush3.bf16.xpose.msra.mxu0 %v72_v3  ;;  %v350_v35 = vsel %vm67_vm0, %v342_v33, 0  ;;  %v477_v39 = vpack.c.bf16 %v1087_v36, %v1087_v36  ;;  %v339_v40 = vpack.c.bf16 %v1080_v38, %v1079_v37  ;;  %v1086_v43 = vld [vmem:[%s1676_s19 + $0x38] sm:$0xff]  ;;  %s1299_s19 = smov 64  }
   0xd   :  { %1163 = vmatprep.subr.bf16.mxu0 %v1294_v0  ;;  %v141_v17 = vsel %vm139_vm2, %v66_v16, 0  ;;  %v474_v44 = vpack.c.bf16 %v1086_v43, %v1085_v42 }
   0xe   :  { %1152 = vmatpush3.bf16.msra.mxu1 %v141_v17  ;;  %v485_v41 = vsel %vm67_vm0, %v477_v39, 0 }
   0xf   :  { %1157 = vmatprep.subr.bf16.mxu1 %v1294_v0 }
  0x13   :  { %1148 = vmatmul.mubr.msk.bf16.vlgmr.msra.gmra.mrb[0].mxu0 %vm67_vm0, %v62_v6 }
  0x14   :  { %1165 = vmatprep.mubr.msk.bf16.mxu0 %vm1295_vm1, %v1294_v0 }
  0xe6   :  { %v108_v7 = vpop.f32.mrb[0].mxu0 }
  0xe7   :  { %v115_v8 = vmul.f32 0.35355338, %v108_v7  ;;  %v1149_v9 = vpop.f32.mrb[1].mxu0 }
  0xe8   :  { %v111_v10 = vpop.f32.mrb[2].mxu0 }
  0xe9   :  { %v116_v11 = vmul.f32 0.35355338, %v111_v10  ;;  %v1150_v12 = vpop.f32.mrb[3].mxu0  ;;  %v117_v13 = vsel %vm67_vm0, %v115_v8, -inf }
  0xea   :  { %118 = vmax.xlane.f32.xlu0 %v117_v13 }
  0xeb   :  { %v120_v14 = vsel %vm67_vm0, %v116_v11, -inf }
  0xee   :  { %121 = vmax.xlane.f32.xlu0 %v120_v14 }
 0x177   :  { %v119_v18 = vpop.xlane.xlu0 %118 }
 0x178   :  { %v123_v19 = vsub.f32 %v115_v8, %v119_v18 }
 0x17a   :  { %v125_v20 = vmul.f32 1.442695, %v123_v19 }
 0x17b   :  { %v122_v21 = vpop.xlane.xlu0 %121 }
 0x17c   :  { %v124_v22 = vsub.f32 %v116_v11, %v122_v21  ;;  %1246 = vpow2.f32 %v125_v20  ;;  %v1076_v11 = vld [vmem:[%s1677_s3 + $0x8] sm:$0xff] }
 0x17d   :  { %v204_v12 = vpack.c.bf16 %v1076_v11, %v1076_v11 }
 0x17e   :  { %v127_v23 = vmul.f32 1.442695, %v124_v22 }
 0x17f   :  { %v277_v13 = vsel %vm139_vm2, %v204_v12, 0 }
 0x180   :  { %1248 = vpow2.f32 %v127_v23  ;;  %1164 = vmatpush3.bf16.msra.mxu0 %v277_v13 }
 0x181   :  { %1175 = vmatprep.subr.bf16.mxu0 %v1294_v0 }
 0x186   :  { %v1426_v26 = vpop.eup %1246 }
 0x187   :  { %v129_v42 = vsel %vm67_vm0, %v1426_v26, 0.0 }
 0x18a   :  { %v1428_v27 = vpop.eup %1248 }
 0x18b   :  { %v135_v28 = vpack.c.bf16 %v1428_v27, %v1426_v26  ;;  %v132_v10 = vsel %vm67_vm0, %v1428_v27, 0.0  ;;  %v1082_v27 = vld [vmem:[%s1677_s3 + $0x10] sm:$0xff] }
 0x18c   :  { %v345_v31 = vpack.c.bf16 %v1082_v27, %v1082_v27 }
 0x18d   :  { %1154 = vmatmul.mubr.msk.bf16.vlgmr.msra.gmra.mrb[0].mxu1 %vm67_vm0, %v135_v28 }
 0x18e   :  { %1158 = vmatpush3.bf16.xpose.msra.mxu1 %v209_v29  ;;  %1159 = vmatprep.mubr.msk.bf16.mxu1 %vm1295_vm1, %v1294_v0  ;;  %v418_v39 = vsel %vm139_vm2, %v345_v31, 0 }
 0x18f   :  { %1169 = vmatprep.subr.bf16.mxu1 %v1294_v0 }
 0x195   :  { %1160 = vmatmul.mubr.msk.bf16.vlgmr.msra.gmra.mrb[4].mxu1 %vm67_vm0, %v198_v34 }
 0x196   :  { %1170 = vmatpush3.bf16.xpose.msra.mxu1 %v350_v35  ;;  %1171 = vmatprep.mubr.msk.bf16.mxu1 %vm1295_vm1, %v1294_v0 }
 0x197   :  { %1181 = vmatprep.subr.bf16.mxu1 %v1294_v0 }
 0x19d   :  { %1172 = vmatmul.mubr.msk.bf16.vlgmr.msra.gmra.mrb[8].mxu1 %vm67_vm0, %v339_v40 }
 0x19e   :  { %1182 = vmatpush3.bf16.xpose.msra.mxu1 %v485_v41  ;;  %1183 = vmatprep.mubr.msk.bf16.mxu1 %vm1295_vm1, %v1294_v0  ;;  %v1088_v41 = vld [vmem:[%s1677_s3 + $0x18] sm:$0xff]  ;;  %s1296_s3 = smov 8  }
 0x19f   :  { %1193 = vmatprep.subr.bf16.mxu1 %v1294_v0  ;;  %v480_v43 = vpack.c.bf16 %v1088_v41, %v1088_v41  ;;  %v611_v41 = vld [vmem:[%s1654_s0 + $0x8] sm:$0xff] }
 0x1a5   :  { %1184 = vmatmul.mubr.msk.bf16.vlgmr.msra.gmra.mrb[12].mxu1 %vm67_vm0, %v474_v44 }
 0x1a6   :  { %1197 = vmatprep.mubr.msk.bf16.mxu1 %vm1295_vm1, %v1294_v0 }
 0x260   :  { %v1474_v45 = vpop.f32.mrb[0].mxu1 }
 0x261   :  { %v1155_v46 = vpop.f32.mrb[1].mxu1 }
 0x262   :  { %v1476_v47 = vpop.f32.mrb[2].mxu1 }
 0x263   :  { %v1156_v48 = vpop.f32.mrb[3].mxu1 }
 0x268   :  { %v245_v49 = vpop.f32.mrb[4].mxu1 }
 0x269   :  { %v252_v50 = vmul.f32 0.35355338, %v245_v49  ;;  %v1161_v51 = vpop.f32.mrb[5].mxu1 }
 0x26a   :  { %v248_v52 = vpop.f32.mrb[6].mxu1 }
 0x26b   :  { %v253_v53 = vmul.f32 0.35355338, %v248_v52  ;;  %v1162_v54 = vpop.f32.mrb[7].mxu1  ;;  %v254_v55 = vsel %vm67_vm0, %v252_v50, -inf }
 0x26c   :  { %255 = vmax.xlane.f32.xlu1 %v254_v55 }
 0x26d   :  { %v257_v56 = vsel %vm67_vm0, %v253_v53, -inf }
 0x270   :  { %258 = vmax.xlane.f32.xlu1 %v257_v56  ;;  %v386_v57 = vpop.f32.mrb[8].mxu1 }
 0x271   :  { %v393_v58 = vmul.f32 0.35355338, %v386_v57  ;;  %v1173_v59 = vpop.f32.mrb[9].mxu1 }
 0x272   :  { %v389_v60 = vpop.f32.mrb[10].mxu1 }
 0x273   :  { %v394_v61 = vmul.f32 0.35355338, %v389_v60  ;;  %v1174_v62 = vpop.f32.mrb[11].mxu1  ;;  %v395_v63 = vsel %vm67_vm0, %v393_v58, -inf }
 0x274   :  { %396 = vmax.xlane.f32.xlu0 %v395_v63 }
 0x275   :  { %v398_v1 = vsel %vm67_vm0, %v394_v61, -inf }
 0x276   :  { %399 = vmax.xlane.f32.xlu1 %v398_v1 }
 0x278   :  { %v521_v2 = vpop.f32.mrb[12].mxu1 }
 0x279   :  { %v528_v3 = vmul.f32 0.35355338, %v521_v2  ;;  %v1185_v4 = vpop.f32.mrb[13].mxu1 }
 0x27a   :  { %v524_v5 = vpop.f32.mrb[14].mxu1 }
 0x27b   :  { %v529_v6 = vmul.f32 0.35355338, %v524_v5  ;;  %v1186_v7 = vpop.f32.mrb[15].mxu1  ;;  %v530_v8 = vsel %vm67_vm0, %v528_v3, -inf }
 0x27c   :  { %531 = vmax.xlane.f32.xlu0 %v530_v8 }
 0x27d   :  { %v533_v9 = vsel %vm67_vm0, %v529_v6, -inf }
 0x27e   :  { %534 = vmax.xlane.f32.xlu1 %v533_v9 }
 0x280   :  { %133 = vadd.xlane.f32.xlu0 %v132_v10 }
 0x2f9   :  { %v256_v14 = vpop.xlane.xlu1 %255 }
 0x2fa   :  { %v260_v15 = vsub.f32 %v252_v50, %v256_v14  ;;  %v553_v50 = vsel %vm139_vm2, %v480_v43, 0 }
 0x2fc   :  { %v262_v16 = vmul.f32 1.442695, %v260_v15 }
 0x2fd   :  { %v259_v17 = vpop.xlane.xlu1 %258 }
 0x2fe   :  { %1250 = vpow2.f32 %v262_v16  ;;  %v261_v18 = vsub.f32 %v253_v53, %v259_v17 }
 0x300   :  { %v264_v19 = vmul.f32 1.442695, %v261_v18 }
 0x301   :  { %v397_v20 = vpop.xlane.xlu0 %396 }
 0x302   :  { %1252 = vpow2.f32 %v264_v19  ;;  %v401_v21 = vsub.f32 %v393_v58, %v397_v20  ;;  %v1236_v20 = vld [vmem:[%s1653_s6] sm:$0xff]  }
 0x303   :  { %v400_v22 = vpop.xlane.xlu1 %399  ;;  %1194 = vmatpush3.bf16.msra.mxu1 %v1236_v20  ;;  %v1243_v20 = vld [vmem:[%s1659_s12 + $0x18] sm:$0xff]  }
 0x304   :  { %v402_v23 = vsub.f32 %v394_v61, %v400_v22  ;;  %v403_v24 = vmul.f32 1.442695, %v401_v21  ;;  %v1237_v21 = vld [vmem:[%s1653_s6 + $0x8] sm:$0xff]   ;;  %1195 = vmatprep.subr.bf16.mxu1 %v1294_v0 }
 0x306   :  { %v405_v25 = vmul.f32 1.442695, %v402_v23 }
 0x307   :  { %1196 = vmatpush3.bf16.msra.mxu1 %v1237_v21  ;;  %v1097_v21 = vld [vmem:[%s1660_s11] ss:$0 sm:$0xff] }
 0x308   :  { %v1251_v28 = vpop.eup %1250  ;;  %1254 = vpow2.f32 %v405_v25  ;;  %1209 = vmatprep.subr.bf16.mxu1 %v1294_v0 }
 0x309   :  { %v532_v29 = vpop.xlane.xlu0 %531  ;;  %v266_v30 = vsel %vm67_vm0, %v1251_v28, 0.0  ;;  %1256 = vpow2.f32 %v403_v24 }
 0x30a   :  { %v536_v32 = vsub.f32 %v528_v3, %v532_v29  ;;  %267 = vadd.xlane.f32.xlu0 %v266_v30 }
 0x30b   :  { %v535_v33 = vpop.xlane.xlu1 %534 }
 0x30c   :  { %v1253_v34 = vpop.eup %1252  ;;  %v538_v35 = vmul.f32 1.442695, %v536_v32  ;;  %v537_v36 = vsub.f32 %v529_v6, %v535_v33 }
 0x30d   :  { %v269_v37 = vsel %vm67_vm0, %v1253_v34, 0.0  ;;  %v272_v38 = vpack.c.bf16 %v1253_v34, %v1251_v28  ;;  %v134_v51 = vpop.xlane.xlu0 %133 }
 0x30e   :  { %1258 = vpow2.f32 %v538_v35  ;;  %v540_v40 = vmul.f32 1.442695, %v537_v36  ;;  %270 = vadd.xlane.f32.xlu0 %v269_v37 }
 0x30f   :  { %1166 = vmatmul.mubr.msk.bf16.vlgmr.msra.gmra.mrb[4].mxu0 %vm67_vm0, %v272_v38 }
 0x310   :  { %1260 = vpow2.f32 %v540_v40  ;;  %1176 = vmatpush3.bf16.msra.mxu0 %v418_v39  ;;  %1177 = vmatprep.mubr.msk.bf16.mxu0 %vm1295_vm1, %v1294_v0  ;;  %v610_v39 = vld [vmem:[%s1654_s0] sm:$0xff] }
 0x311   :  { %1187 = vmatprep.subr.bf16.mxu0 %v1294_v0  ;;  %1262 = vrcp.f32 %v134_v51  ;;  %v1091_v40 = vld [vmem:[%s1655_s7] ss:$0 sm:$0xff] }
 0x312   :  { %v1255_v44 = vpop.eup %1254  ;;  %130 = vadd.xlane.f32.xlu0 %v129_v42  ;;  %v622_v42 = vadd.f32 %v1091_v40, %v610_v39  ;;  %v623_v43 = vadd.f32 %v1091_v40, %v611_v41 }
 0x313   :  { %v410_v46 = vsel %vm67_vm0, %v1255_v44, 0.0  ;;  %v1257_v48 = vpop.eup %1256 }
 0x314   :  { %411 = vadd.xlane.f32.xlu1 %v410_v46  ;;  %v413_v49 = vpack.c.bf16 %v1255_v44, %v1257_v48  ;;  %v407_v56 = vsel %vm67_vm0, %v1257_v48, 0.0 }
 0x317   :  { %1178 = vmatmul.mubr.msk.bf16.vlgmr.msra.gmra.mrb[8].mxu0 %vm67_vm0, %v413_v49 }
 0x318   :  { %v1259_v52 = vpop.eup %1258  ;;  %1188 = vmatpush3.bf16.msra.mxu0 %v553_v50  ;;  %1189 = vmatprep.mubr.msk.bf16.mxu0 %vm1295_vm1, %v1294_v0 }
 0x319   :  { %v542_v26 = vsel %vm67_vm0, %v1259_v52, 0.0  ;;  %1201 = vmatprep.subr.bf16.mxu0 %v1294_v0 }
 0x31a   :  { %v1261_v53 = vpop.eup %1260  ;;  %543 = vadd.xlane.f32.xlu1 %v542_v26 }
 0x31b   :  { %v545_v54 = vsel %vm67_vm0, %v1261_v53, 0.0  ;;  %v548_v55 = vpack.c.bf16 %v1261_v53, %v1259_v52  ;;  %v1263_v57 = vpop.eup %1262 }
 0x31c   :  { %v187_v58 = vmul.f32 %v1263_v57, %v1476_v47 }
 0x31e   :  { %546 = vadd.xlane.f32.xlu1 %v545_v54 }
 0x31f   :  { %1190 = vmatmul.mubr.msk.bf16.vlgmr.msra.gmra.mrb[12].mxu0 %vm67_vm0, %v548_v55 }
 0x320   :  { %1205 = vmatprep.mubr.msk.bf16.mxu0 %vm1295_vm1, %v1294_v0 }
 0x322   :  { %408 = vadd.xlane.f32.xlu1 %v407_v56 }
 0x328   :  { %190 = vrot.lane.b32.xlu0 %v187_v58, %s1296_s3 }
 0x397   :  { %v268_v59 = vpop.xlane.xlu0 %267 }
 0x39b   :  { %v271_v60 = vpop.xlane.xlu0 %270 }
 0x39f   :  { %v131_v61 = vpop.xlane.xlu0 %130 }
 0x3a0   :  { %1264 = vrcp.f32 %v131_v61 }
 0x3a1   :  { %v412_v2 = vpop.xlane.xlu1 %411  ;;  %1266 = vrcp.f32 %v268_v59 }
 0x3a2   :  { %1268 = vrcp.f32 %v271_v60 }
 0x3a3   :  { %v191_v1 = vpop.permute.xlu0 %190 }
 0x3a7   :  { %v544_v3 = vpop.xlane.xlu1 %543 }
 0x3aa   :  { %v1265_v62 = vpop.eup %1264 }
 0x3ab   :  { %v186_v63 = vmul.f32 %v1265_v62, %v1474_v45  ;;  %v547_v4 = vpop.xlane.xlu1 %546  ;;  %v1267_v5 = vpop.eup %1266 }
 0x3ac   :  { %v1269_v9 = vpop.eup %1268 }
 0x3ad   :  { %188 = vst.msk [vmem:[#allocation2] sm:$0xff] %vm67_vm0, %v186_v63  ;;  %v1238_v63 = vld [vmem:[%s1656_s10] sm:$0xff]  }
 0x3ae   :  { %194 = vst.msk [vmem:[#allocation2] sm:$0xff] %vm193_vm3, %v191_v1  ;;  %1202 = vmatpush3.bf16.msra.mxu0 %v1238_v63  ;;  %v1239_v1 = vld [vmem:[%s1656_s10 + $0x8] sm:$0xff]  }
 0x3af   :  { %v409_v47 = vpop.xlane.xlu1 %408  ;;  %1203 = vmatprep.subr.bf16.mxu0 %v1294_v0 }
 0x3b0   :  { %1270 = vrcp.f32 %v409_v47 }
 0x3b1   :  { %1272 = vrcp.f32 %v412_v2 }
 0x3b2   :  { %1274 = vrcp.f32 %v544_v3  ;;  %1204 = vmatpush3.bf16.msra.mxu0 %v1239_v1 }
 0x3b3   :  { %1276 = vrcp.f32 %v547_v4  ;;  %1221 = vmatprep.subr.bf16.mxu0 %v1294_v0 }
 0x3ba   :  { %v1271_v12 = vpop.eup %1270 }
 0x3bb   :  { %v1273_v16 = vpop.eup %1272 }
 0x3bc   :  { %v1275_v22 = vpop.eup %1274 }
 0x3bd   :  { %v1277_v29 = vpop.eup %1276 }
 0x3e2   :  { %v313_v6 = vpop.f32.mrb[4].mxu0 }
 0x3e3   :  { %v322_v7 = vmul.f32 %v1267_v5, %v313_v6  ;;  %v1167_v8 = vpop.f32.mrb[5].mxu0 }
 0x3e4   :  { %v316_v45 = vpop.f32.mrb[6].mxu0 }
 0x3e5   :  { %v323_v10 = vmul.f32 %v1269_v9, %v316_v45  ;;  %325 = vrot.lane.b32.xlu1 %v322_v7, %s1297_s21  ;;  %v1168_v11 = vpop.f32.mrb[7].mxu0  ;;  %v1095_v9 = vld [vmem:[%s1657_s8] ss:$0 sm:$0xff] }
 0x3e7   :  { %331 = vrot.lane.b32.xlu0 %v323_v10, %s1298_s22 }
 0x3ea   :  { %v454_v13 = vpop.f32.mrb[8].mxu0 }
 0x3eb   :  { %v463_v14 = vmul.f32 %v1271_v12, %v454_v13  ;;  %v1179_v15 = vpop.f32.mrb[9].mxu0  ;;  %v1096_v12 = vld [vmem:[%s1658_s9] ss:$0 sm:$0xff] }
 0x3ec   :  { %v457_v17 = vpop.f32.mrb[10].mxu0 }
 0x3ed   :  { %465 = vst.msk [vmem:[#allocation2 + $0x8] sm:$0xff] %vm67_vm0, %v463_v14  ;;  %v464_v18 = vmul.f32 %v1273_v16, %v457_v17  ;;  %v1180_v19 = vpop.f32.mrb[11].mxu0  ;;  %v1240_v17 = vld [vmem:[%s1659_s12] sm:$0xff]  }
 0x3ee   :  { %v1242_v19 = vld [vmem:[%s1659_s12 + $0x10] sm:$0xff]  }
 0x3ef   :  { %467 = vrot.lane.b32.xlu1 %v464_v18, %s1296_s3  ;;  %v1241_v18 = vld [vmem:[%s1659_s12 + $0x8] sm:$0xff]  }
 0x3f2   :  { %v589_v23 = vpop.f32.mrb[12].mxu0 }
 0x3f3   :  { %v598_v24 = vmul.f32 %v1275_v22, %v589_v23  ;;  %v1191_v25 = vpop.f32.mrb[13].mxu0 }
 0x3f4   :  { %v592_v27 = vpop.f32.mrb[14].mxu0 }
 0x3f5   :  { %601 = vrot.lane.b32.xlu1 %v598_v24, %s1297_s21  ;;  %v1192_v28 = vpop.f32.mrb[15].mxu0  ;;  %v599_v30 = vmul.f32 %v1277_v29, %v592_v27 }
 0x3f9   :  { %606 = vrot.lane.b32.xlu1 %v599_v30, %s1298_s22 }
 0x457   :  { %v326_v31 = vpop.permute.xlu1 %325 }
 0x458   :  { %329 = vst.msk [vmem:[#allocation2] sm:$0xff] %vm328_vm4, %v326_v31 }
 0x459   :  { %v332_v32 = vpop.permute.xlu0 %331 }
 0x45a   :  { %335 = vst.msk [vmem:[#allocation2] sm:$0xff] %vm334_vm5, %v332_v32 }
 0x461   :  { %v468_v33 = vpop.permute.xlu1 %467  ;;  %v612_v36 = vld [vmem:[#allocation2] sm:$0xff] }
 0x462   :  { %470 = vst.msk [vmem:[#allocation2 + $0x8] sm:$0xff] %vm193_vm3, %v468_v33 }
 0x467   :  { %v602_v34 = vpop.permute.xlu1 %601 }
 0x468   :  { %604 = vst.msk [vmem:[#allocation2 + $0x8] sm:$0xff] %vm328_vm4, %v602_v34 }
 0x46b   :  { %v607_v35 = vpop.permute.xlu1 %606 }
 0x46c   :  { %609 = vst.msk [vmem:[#allocation2 + $0x8] sm:$0xff] %vm334_vm5, %v607_v35 }
 0x473   :  { %v613_v37 = vld [vmem:[#allocation2 + $0x8] sm:$0xff] }
 0x474   :  { %v614_v38 = vpack.c.bf16 %v613_v37, %v612_v36 }
 0x476   :  { %1198 = vmatmul.mubr.msk.bf16.vlgmr.msra.gmra.mrb[16].mxu1 %vm640_vm6, %v614_v38 }
 0x477   :  { %1217 = vmatprep.mubr.msk.bf16.mxu1 %vm1295_vm1, %v1294_v0  ;;  %1210 = vmatpush3.bf16.msra.mxu1 %v1240_v17 }
 0x478   :  { %1211 = vmatprep.subr.bf16.mxu1 %v1294_v0 }
 0x47b   :  { %1212 = vmatpush3.bf16.msra.mxu1 %v1241_v18 }
 0x47c   :  { %1213 = vmatprep.subr.bf16.mxu1 %v1294_v0 }
 0x47f   :  { %1214 = vmatpush3.bf16.msra.mxu1 %v1242_v19 }
 0x480   :  { %1215 = vmatprep.subr.bf16.mxu1 %v1294_v0 }
 0x483   :  { %1216 = vmatpush3.bf16.msra.mxu1 %v1243_v20  ;;  %v1111_v20 = vld [vmem:[%s1667_s17] ss:$0 sm:$0xff]  ;;  %s1300_s17 = smov 32  }
 0x549   :  { %v678_v44 = vpop.f32.mrb[16].mxu1 }
 0x54a   :  { %v1546_v46 = vadd.f32 %v678_v44, %v622_v42  ;;  %v1199_v48 = vpop.f32.mrb[17].mxu1  ;;  %v1103_v44 = vld [vmem:[%s1661_s13] ss:$0 sm:$0xff] }
 0x54b   :  { %v681_v49 = vpop.f32.mrb[18].mxu1 }
 0x54c   :  { %v1548_v50 = vadd.f32 %v681_v49, %v623_v43  ;;  %v1200_v51 = vpop.f32.mrb[19].mxu1  ;;  %v687_v52 = vsel %vm640_vm6, %v1546_v46, 0.0 }
 0x54d   :  { %688 = vadd.xlane.f32.xlu0 %v687_v52 }
 0x54e   :  { %v690_v26 = vsel %vm640_vm6, %v1548_v50, 0.0 }
 0x54f   :  { %691 = vadd.xlane.f32.xlu1 %v690_v26 }
 0x5da   :  { %v689_v53 = vpop.xlane.xlu0 %688 }
 0x5db   :  { %v694_v54 = vmul.f32 0.03125, %v689_v53 }
 0x5dc   :  { %v692_v55 = vpop.xlane.xlu1 %691 }
 0x5dd   :  { %v696_v56 = vsub.f32 %v1546_v46, %v694_v54  ;;  %v695_v57 = vmul.f32 0.03125, %v692_v55 }
 0x5df   :  { %v697_v58 = vsub.f32 %v1548_v50, %v695_v57  ;;  %v698_v59 = vmul.f32 %v696_v56, %v696_v56 }
 0x5e1   :  { %v700_v60 = vsel %vm640_vm6, %v698_v59, 0.0  ;;  %v699_v61 = vmul.f32 %v697_v58, %v697_v58 }
 0x5e2   :  { %701 = vadd.xlane.f32.xlu0 %v700_v60 }
 0x5e3   :  { %v703_v62 = vsel %vm640_vm6, %v699_v61, 0.0 }
 0x5e6   :  { %704 = vadd.xlane.f32.xlu0 %v703_v62 }
 0x66f   :  { %v702_v2 = vpop.xlane.xlu0 %701 }
 0x670   :  { %v706_v3 = vmul.f32 0.03125, %v702_v2 }
 0x672   :  { %v708_v4 = vadd.f32 1e-05, %v706_v3  ;;  %v1244_v3 = vld [vmem:[%s1663_s16] sm:$0xff]  }
 0x673   :  { %v705_v47 = vpop.xlane.xlu0 %704 }
 0x674   :  { %1278 = vrsqrt.f32 %v708_v4  ;;  %v707_v5 = vmul.f32 0.03125, %v705_v47  ;;  %v1245_v4 = vld [vmem:[%s1663_s16 + $0x8] sm:$0xff]   ;;  %v1024_v47 = vld [vmem:[%s1664_s5] sm:$0xff] }
 0x676   :  { %v709_v6 = vadd.f32 1e-05, %v707_v5 }
 0x678   :  { %1280 = vrsqrt.f32 %v709_v6 }
 0x67e   :  { %v1279_v7 = vpop.eup %1278 }
 0x67f   :  { %v712_v8 = vmul.f32 %v1279_v7, %v696_v56 }
 0x681   :  { %v721_v10 = vmul.f32 %v1095_v9, %v712_v8 }
 0x682   :  { %v1281_v45 = vpop.eup %1280 }
 0x683   :  { %v713_v11 = vmul.f32 %v1281_v45, %v697_v58  ;;  %v730_v14 = vadd.f32 %v1096_v12, %v721_v10 }
 0x685   :  { %v722_v13 = vmul.f32 %v1095_v9, %v713_v11 }
 0x687   :  { %v731_v15 = vadd.f32 %v1096_v12, %v722_v13 }
 0x689   :  { %v732_v16 = vpack.c.bf16 %v731_v15, %v730_v14  ;;  %v1110_v15 = vld [vmem:[%s1666_s15] ss:$0 sm:$0xff] }
 0x68b   :  { %1206 = vmatmul.mubr.msk.bf16.vlgmr.msra.gmra.mrb[16].mxu0 %vm640_vm6, %v732_v16 }
 0x68c   :  { %1225 = vmatprep.mubr.msk.bf16.mxu0 %vm1295_vm1, %v1294_v0  ;;  %1222 = vmatpush3.bf16.msra.mxu0 %v1244_v3 }
 0x68d   :  { %1223 = vmatprep.subr.bf16.mxu0 %v1294_v0  ;;  %v1109_v0 = vld [vmem:[%s1665_s14] ss:$0 sm:$0xff] }
 0x690   :  { %1224 = vmatpush3.bf16.msra.mxu0 %v1245_v4 }
 0x75e   :  { %v793_v22 = vpop.f32.mrb[16].mxu0 }
 0x75f   :  { %v794_v23 = vadd.f32 %v1097_v21, %v793_v22  ;;  %v1207_v24 = vpop.f32.mrb[17].mxu0 }
 0x760   :  { %v796_v25 = vpop.f32.mrb[18].mxu0 }
 0x761   :  { %v797_v27 = vadd.f32 %v1097_v21, %v796_v25  ;;  %816 = vrot.lane.b32.xlu0 %v794_v23, %s1299_s19  ;;  %v1208_v28 = vpop.f32.mrb[19].mxu0  ;;  %v1101_v29 = vmul.f32 -1.442695, %v794_v23 }
 0x763   :  { %818 = vrot.lane.b32.xlu1 %v797_v27, %s1299_s19  ;;  %v1102_v30 = vmul.f32 -1.442695, %v797_v27  ;;  %1282 = vpow2.f32 %v1101_v29 }
 0x765   :  { %1284 = vpow2.f32 %v1102_v30 }
 0x76d   :  { %v1283_v31 = vpop.eup %1282 }
 0x76e   :  { %v806_v33 = vadd.f32 1.0, %v1283_v31  ;;  %v1023_v31 = vld [vmem:[%s1668_s4] sm:$0xff] }
 0x76f   :  { %v1285_v32 = vpop.eup %1284 }
 0x770   :  { %v807_v34 = vadd.f32 1.0, %v1285_v32  ;;  %1286 = vrcp.f32 %v806_v33 }
 0x772   :  { %1288 = vrcp.f32 %v807_v34 }
 0x77a   :  { %v1287_v35 = vpop.eup %1286 }
 0x77b   :  { %v812_v38 = vmul.f32 %v1287_v35, %v794_v23 }
 0x77c   :  { %v1289_v36 = vpop.eup %1288 }
 0x77d   :  { %v813_v39 = vmul.f32 %v1289_v36, %v797_v27 }
 0x7d3   :  { %v817_v37 = vpop.permute.xlu0 %816 }
 0x7d4   :  { %v822_v41 = vmul.f32 %v817_v37, %v812_v38 }
 0x7d5   :  { %v819_v40 = vpop.permute.xlu1 %818 }
 0x7d6   :  { %v823_v42 = vmul.f32 %v819_v40, %v813_v39 }
 0x7d8   :  { %v824_v43 = vpack.c.bf16 %v823_v42, %v822_v41 }
 0x7da   :  { %1218 = vmatmul.mubr.msk.bf16.vlgmr.msra.gmra.mrb[20].mxu1 %vm864_vm7, %v824_v43 }
 0x8ad   :  { %v902_v48 = vpop.f32.mrb[20].mxu1 }
 0x8ae   :  { %v903_v49 = vadd.f32 %v1103_v44, %v902_v48  ;;  %v1219_v51 = vpop.f32.mrb[21].mxu1 }
 0x8af   :  { %v905_v52 = vpop.f32.mrb[22].mxu1 }
 0x8b0   :  { %v909_v26 = vadd.f32 %v903_v49, %v1546_v46  ;;  %v906_v53 = vadd.f32 %v1103_v44, %v905_v52  ;;  %v1220_v54 = vpop.f32.mrb[23].mxu1 }
 0x8b2   :  { %1043 = vst.msk [vmem:[%s1662_s18] sm:$0xff] %vm640_vm6, %v909_v26  ;;  %v910_v55 = vadd.f32 %v906_v53, %v1548_v50  ;;  %v911_v56 = vsel %vm640_vm6, %v909_v26, 0.0 }
 0x8b3   :  { %912 = vadd.xlane.f32.xlu1 %v911_v56 }
 0x8b4   :  { %1044 = vst.msk [vmem:[%s1662_s18 + $0x8] sm:$0xff] %vm640_vm6, %v910_v55  ;;  %v914_v57 = vsel %vm640_vm6, %v910_v55, 0.0 }
 0x8b5   :  { %915 = vadd.xlane.f32.xlu0 %v914_v57 }
 0x940   :  { %v913_v46 = vpop.xlane.xlu1 %912 }
 0x941   :  { %v917_v58 = vmul.f32 0.03125, %v913_v46 }
 0x942   :  { %v916_v59 = vpop.xlane.xlu0 %915 }
 0x943   :  { %v919_v60 = vsub.f32 %v909_v26, %v917_v58  ;;  %v918_v61 = vmul.f32 0.03125, %v916_v59 }
 0x945   :  { %v920_v62 = vsub.f32 %v910_v55, %v918_v61  ;;  %v921_v63 = vmul.f32 %v919_v60, %v919_v60 }
 0x947   :  { %v923_v50 = vsel %vm640_vm6, %v921_v63, 0.0  ;;  %v922_v1 = vmul.f32 %v920_v62, %v920_v62 }
 0x948   :  { %924 = vadd.xlane.f32.xlu0 %v923_v50 }
 0x949   :  { %v926_v2 = vsel %vm640_vm6, %v922_v1, 0.0 }
 0x94a   :  { %927 = vadd.xlane.f32.xlu1 %v926_v2 }
 0x95e   :  { %1028 = vrot.lane.b32.xlu0 %v1024_v47, %s1299_s19 }
 0x9d5   :  { %v925_v5 = vpop.xlane.xlu0 %924 }
 0x9d6   :  { %v929_v6 = vmul.f32 0.03125, %v925_v5 }
 0x9d7   :  { %v928_v7 = vpop.xlane.xlu1 %927 }
 0x9d8   :  { %v931_v8 = vadd.f32 1e-05, %v929_v6  ;;  %v930_v9 = vmul.f32 0.03125, %v928_v7 }
 0x9d9   :  { %v1029_v22 = vpop.permute.xlu0 %1028 }
 0x9da   :  { %1290 = vrsqrt.f32 %v931_v8  ;;  %v932_v45 = vadd.f32 1e-05, %v930_v9 }
 0x9dc   :  { %1292 = vrsqrt.f32 %v932_v45 }
 0x9e4   :  { %v1291_v10 = vpop.eup %1290 }
 0x9e5   :  { %v935_v11 = vmul.f32 %v1291_v10, %v919_v60 }
 0x9e6   :  { %v1293_v12 = vpop.eup %1292 }
 0x9e7   :  { %v944_v13 = vmul.f32 %v1109_v0, %v935_v11  ;;  %v936_v14 = vmul.f32 %v1293_v12, %v920_v62 }
 0x9e9   :  { %v945_v16 = vmul.f32 %v1109_v0, %v936_v14  ;;  %v953_v17 = vadd.f32 %v1110_v15, %v944_v13 }
 0x9eb   :  { %v954_v18 = vadd.f32 %v1110_v15, %v945_v16 }
 0x9ed   :  { %v955_v19 = vpack.c.bf16 %v954_v18, %v953_v17 }
 0x9ef   :  { %1226 = vmatmul.mubr.msk.bf16.vlgmr.msra.gmra.mrb[20].mxu0 %vm640_vm6, %v955_v19 }
 0xac2   :  { %v1016_v21 = vpop.f32.mrb[20].mxu0 }
 0xac3   :  { %v1017_v23 = vadd.f32 %v1111_v20, %v1016_v21  ;;  %v1227_v24 = vpop.f32.mrb[21].mxu0 }
 0xac4   :  { %v1019_v25 = vpop.f32.mrb[22].mxu0 }
 0xac5   :  { %v1031_v27 = vmul.f32 %v1029_v22, %v1017_v23  ;;  %v1020_v28 = vadd.f32 %v1111_v20, %v1019_v25  ;;  %v1228_v29 = vpop.f32.mrb[23].mxu0  ;;  %v1025_v32 = vmul.f32 %v1023_v31, %v1017_v23 }
 0xac7   :  { %1035 = vrot.lane.b32.xlu1 %v1031_v27, %s1299_s19  ;;  %v1032_v30 = vmul.f32 %v1029_v22, %v1020_v28  ;;  %v1026_v35 = vmul.f32 %v1023_v31, %v1020_v28 }
 0xacb   :  { %1037 = vrot.lane.b32.xlu1 %v1032_v30, %s1299_s19 }
 0xb39   :  { %v1036_v33 = vpop.permute.xlu1 %1035 }
 0xb3a   :  { %v1041_v34 = vadd.f32 %v1036_v33, %v1025_v32 }
 0xb3c   :  { %1047 = vrot.lane.b32.xlu1 %v1041_v34, %s1300_s17 }
 0xb3d   :  { %v1038_v36 = vpop.permute.xlu1 %1037 }
 0xb3e   :  { %v1042_v37 = vadd.f32 %v1038_v36, %v1026_v35 }
 0xb40   :  { %1058 = vrot.lane.b32.xlu1 %v1017_v23, %s1300_s17  ;;  %1049 = vrot.lane.b32.xlu0 %v1042_v37, %s1300_s17 }
 0xb44   :  { %1060 = vrot.lane.b32.xlu0 %v1020_v28, %s1300_s17 }
 0xbae   :  { %v1048_v38 = vpop.permute.xlu1 %1047 }
 0xbaf   :  { %1054 = vst.msk [vmem:[%s1662_s18] sm:$0xff] %vm1053_vm8, %v1048_v38 }
 0xbb2   :  { %v1059_v39 = vpop.permute.xlu1 %1058  ;;  %v1050_v40 = vpop.permute.xlu0 %1049 }
 0xbb3   :  { %1065 = vst.msk [vmem:[%s1662_s18] sm:$0xff] %vm1064_vm9, %v1059_v39 }
 0xbb4   :  { %1055 = vst.msk [vmem:[%s1662_s18 + $0x8] sm:$0xff] %vm1053_vm8, %v1050_v40 }
 0xbb6   :  { %v1061_v41 = vpop.permute.xlu0 %1060 }
 0xbb7   :  { %1066 = vst.msk [vmem:[%s1662_s18 + $0x8] sm:$0xff] %vm1064_vm9, %v1061_v41 }

</bundles_post_ra>
